<compile_context>
chip_gen: v6e
topology: v6e:2x2x1
jax: 0.10.0
libtpu: 0.0.40
codegen_flags: <defaults>
</compile_context>

<pallas_src>
import jax
import jax.numpy as jnp
from jax.experimental import pallas as pl
from jax.experimental.pallas import tpu as pltpu


def _round_up(x, m):
    return (x + m - 1) // m * m


def _pad2(a, r, c):
    return jnp.pad(a, ((0, r), (0, c))) if (r or c) else a


def _pad1(a, c):
    return jnp.pad(a, (0, c)) if c else a


def _vmem_budget_bytes():
    """Generation-aware VMEM budget with headroom for compiler-internal scratch."""
    cap = 64 * 1024 * 1024  # conservative default: v7x has 64 MiB per TensorCore
    try:
        info = pltpu.get_tpu_info()
        cap = int(getattr(info, "vmem_capacity_bytes", cap)) or cap
    except Exception:
        pass
    # -> ~48 MiB on v7x (64 MiB physical), ~108 MiB on v5e/v6e (128 MiB physical).
    return max(32 * 1024 * 1024, min(int(cap * 0.85), cap - 16 * 1024 * 1024))


def _vmem_footprint(tm, tf, dp, nk, x_bytes, w_bytes, w_bufs):
    """Approximate per-call VMEM footprint (pipeline buffers + intermediates)."""
    f = (2 * tm * dp * x_bytes          # x row tile (double-buffered)
         + 2 * tm * dp * x_bytes        # output row tile (double-buffered)
         + w_bufs * dp * tf * w_bytes   # W1 d_ff-slice
         + w_bufs * tf * dp * w_bytes   # W2 d_ff-slice
         + 2 * (tf + dp) * 4            # biases
         + tm * tf * 4                  # ReLU intermediate h (f32)
         + tm * tf * w_bytes)           # h cast to weight dtype for matmul #2
    if nk > 1:
        f += tm * dp * 4                # f32 accumulator scratch
    return f


def _ffn_kernel_resident(x_ref, w1_ref, b1_ref, w2_ref, b2_ref, o_ref):
    # Whole d_ff in one step: W1/W2/b1/b2 have constant block indices, so they
    # are DMA'd from HBM exactly once and stay VMEM-resident across row tiles.
    h = jnp.dot(x_ref[...], w1_ref[...], preferred_element_type=jnp.float32)
    h = jnp.maximum(h + b1_ref[...], 0.0)
    # dropout(p=0.1) -> identity (eval / inference semantics)
    y = jnp.dot(h.astype(w2_ref.dtype), w2_ref[...],
                preferred_element_type=jnp.float32)
    o_ref[...] = (y + b2_ref[...]).astype(o_ref.dtype)


def _ffn_kernel_streamed(x_ref, w1_ref, b1_ref, w2_ref, b2_ref, o_ref, acc_ref):
    # d_ff streamed in k-slices; fused finalize avoids an extra acc store+load.
    k = pl.program_id(1)
    nk = pl.num_programs(1)

    h = jnp.dot(x_ref[...], w1_ref[...], preferred_element_type=jnp.float32)
    h = jnp.maximum(h + b1_ref[...], 0.0)
    # dropout(p=0.1) -> identity (eval / inference semantics)
    part = jnp.dot(h.astype(w2_ref.dtype), w2_ref[...],
                   preferred_element_type=jnp.float32)

    @pl.when(k == 0)
    def _():
        acc_ref[...] = part

    @pl.when(jnp.logical_and(k > 0, k < nk - 1))
    def _():
        acc_ref[...] += part

    @pl.when(k == nk - 1)
    def _():
        # bias2 added exactly once, in the finalize step.
        o_ref[...] = (acc_ref[...] + part + b2_ref[...]).astype(o_ref.dtype)


def feed_forward(x, w1, b1, w2, b2, *, tm=512, tf=None, vmem_budget=None):
    """x: (batch, seq, d_model) -> (batch, seq, d_model).

    w1: (d_model, d_ff), b1: (d_ff,), w2: (d_ff, d_model), b2: (d_model,)
    (weights pre-transposed vs. PyTorch nn.Linear).
    """
    batch, seq, d_model = x.shape
    d_ff = w1.shape[1]
    assert w1.shape == (d_model, d_ff)
    assert b1.shape == (d_ff,)
    assert w2.shape == (d_ff, d_model)
    assert b2.shape == (d_model,)
    M = batch * seq

    x_bytes = jnp.dtype(x.dtype).itemsize
    w_bytes = jnp.dtype(w1.dtype).itemsize

    # Lane-dense feature dims (multiples of 128).
    Dp = _round_up(d_model, 128)
    Fp0 = _round_up(d_ff, 128)

    # Row tile: multiple of 16 sublanes (covers f32/bf16), default 512 so the
    # per-grid-step overhead and MXU ramp are amortized; capped for small M.
    tm = _round_up(max(16, min(tm, _round_up(M, 16))), 16)
    # Make sure both v7x TensorCores get at least one row tile when M allows.
    if M > 256 and pl.cdiv(M, tm) < 2:
        tm = _round_up(pl.cdiv(M, 2), 16)

    budget = _vmem_budget_bytes() if vmem_budget is None else int(vmem_budget)

    # d_ff tiling: prefer a single reduction step with W1/W2 fully VMEM-resident
    # (they are then DMA'd from HBM exactly once instead of once per row tile).
    w_bufs = 2
    if tf is None:
        if _vmem_footprint(tm, Fp0, Dp, 1, x_bytes, w_bytes, 2) <= budget:
            tf = Fp0
        elif _vmem_footprint(tm, Fp0, Dp, 1, x_bytes, w_bytes, 1) <= budget:
            tf, w_bufs = Fp0, 1          # resident, single-buffered weights
        else:
            # Stream d_ff in the largest 256-aligned slices that fit the budget.
            tf = max(256, min(Fp0, 4096) // 256 * 256)
            while tf > 256 and _vmem_footprint(tm, tf, Dp, 2, x_bytes, w_bytes, 2) > budget:
                tf = max(256, (tf // 2) // 256 * 256)
            while tm > 128 and _vmem_footprint(tm, tf, Dp, 2, x_bytes, w_bytes, 2) > budget:
                tm = max(128, _round_up(tm // 2, 16))
    else:
        tf = _round_up(max(128, min(tf, Fp0)), 128)

    Fp = _round_up(Fp0, tf)
    nk = Fp // tf
    n_rows = pl.cdiv(M, tm)

    # Only feature dims need zero padding (they participate in the contraction).
    # The ragged last row tile is handled by the cdiv grid + masked edge writes,
    # so x is never row-padded (no extra HBM round trip for the activations).
    x2d = x.reshape(M, d_model)
    if Dp != d_model:
        x2d = jnp.pad(x2d, ((0, 0), (0, Dp - d_model)))
    w1p = _pad2(w1, Dp - d_model, Fp - d_ff)
    b1p = _pad1(b1, Fp - d_ff).reshape(1, Fp)
    w2p = _pad2(w2, Fp - d_ff, Dp - d_model)
    b2p = _pad1(b2, Dp - d_model).reshape(1, Dp)

    if nk == 1:
        # Resident path: collapse the reduction axis, weights loaded once.
        w_kwargs = {} if w_bufs == 2 else {"pipeline_mode": pl.Buffered(1)}
        kernel = _ffn_kernel_resident
        grid = (n_rows,)
        in_specs = [
            pl.BlockSpec((tm, Dp), lambda i: (i, 0)),               # x row tile
            pl.BlockSpec((Dp, Fp), lambda i: (0, 0), **w_kwargs),   # W1 resident
            pl.BlockSpec((1, Fp), lambda i: (0, 0)),                # b1 resident
            pl.BlockSpec((Fp, Dp), lambda i: (0, 0), **w_kwargs),   # W2 resident
            pl.BlockSpec((1, Dp), lambda i: (0, 0)),                # b2 resident
        ]
        out_spec = pl.BlockSpec((tm, Dp), lambda i: (i, 0))
        scratch = []
        dims = ("parallel",)
    else:
        kernel = _ffn_kernel_streamed
        grid = (n_rows, nk)
        in_specs = [
            pl.BlockSpec((tm, Dp), lambda i, k: (i, 0)),   # x row tile
            pl.BlockSpec((Dp, tf), lambda i, k: (0, k)),   # W1 k-slice
            pl.BlockSpec((1, tf), lambda i, k: (0, k)),    # b1 k-slice
            pl.BlockSpec((tf, Dp), lambda i, k: (k, 0)),   # W2 k-slice
            pl.BlockSpec((1, Dp), lambda i, k: (0, 0)),    # b2 resident
        ]
        out_spec = pl.BlockSpec((tm, Dp), lambda i, k: (i, 0))
        scratch = [pltpu.VMEM((tm, Dp), jnp.float32)]
        dims = ("parallel", "arbitrary")

    # Cost estimate reflecting actual DMA traffic: weights move once per row
    # tile when streamed, exactly once when resident.
    Mp = n_rows * tm
    flops = 4 * Mp * Dp * Fp
    w_passes = 1 if nk == 1 else n_rows
    bytes_accessed = int(
        2 * Mp * Dp * x_bytes
        + w_passes * (2 * Dp * Fp * w_bytes + Fp * jnp.dtype(b1.dtype).itemsize)
        + Dp * jnp.dtype(b2.dtype).itemsize)

    out2d = pl.pallas_call(
        kernel,
        out_shape=jax.ShapeDtypeStruct((M, Dp), x.dtype),
        grid_spec=pltpu.PrefetchScalarGridSpec(
            num_scalar_prefetch=0,
            grid=grid,
            in_specs=in_specs,
            out_specs=out_spec,
            scratch_shapes=scratch,
        ),
        compiler_params=pltpu.CompilerParams(
            dimension_semantics=dims,
            vmem_limit_bytes=int(budget),
        ),
        cost_estimate=pl.CostEstimate(
            flops=flops, transcendentals=0, bytes_accessed=bytes_accessed),
    )(x2d, w1p, b1p, w2p, b2p)

    return out2d[:, :d_model].reshape(batch, seq, d_model)


def _reference(x, w1, b1, w2, b2):
    d_model = x.shape[-1]
    y = jnp.maximum(x.reshape(-1, d_model) @ w1 + b1, 0.0) @ w2 + b2
    return y.reshape(x.shape[:-1] + (w2.shape[1],))


def _make_params(key, d_model, d_ff, dtype=jnp.float32):
    kw1, kb1, kw2, kb2 = jax.random.split(key, 4)
    bound1 = 1.0 / (d_model ** 0.5)
    w1 = jax.random.uniform(kw1, (d_model, d_ff), minval=-bound1, maxval=bound1, dtype=dtype)
    b1 = jax.random.uniform(kb1, (d_ff,), minval=-bound1, maxval=bound1, dtype=dtype)
    bound2 = 1.0 / (d_ff ** 0.5)
    w2 = jax.random.uniform(kw2, (d_ff, d_model), minval=-bound2, maxval=bound2, dtype=dtype)
    b2 = jax.random.uniform(kb2, (d_model,), minval=-bound2, maxval=bound2, dtype=dtype)
    return w1, b1, w2, b2


if __name__ == "__main__":
    key = jax.random.PRNGKey(0)

    def _run_case(case_key, batch, seq, d_model, d_ff, **kw):
        kx, kp = jax.random.split(case_key)
        x = jax.random.normal(kx, (batch, seq, d_model), dtype=jnp.float32)
        w1, b1, w2, b2 = _make_params(kp, d_model, d_ff)
        out = jax.block_until_ready(feed_forward(x, w1, b1, w2, b2, **kw))
        ref = _reference(x, w1, b1, w2, b2)
        assert out.shape == (batch, seq, d_model)
        err = float(jnp.max(jnp.abs(out - ref)))
        assert jnp.allclose(out, ref, atol=2e-3, rtol=2e-3), err

    k1, k2, k3, k4 = jax.random.split(key, 4)
    # 1) Resident-weight fast path: lane-aligned dims, two 256-row tiles.
    _run_case(k1, 4, 128, 128, 512)
    # 2) Small, non-aligned toy shapes -> feature-dim zero-padding path.
    _run_case(k2, 2, 8, 32, 96)
    # 3) Ragged last row tile (M=600 with tm=512) -> masked edge writes, no x pad.
    _run_case(k3, 2, 300, 128, 384)
    # 4) Forced d_ff streaming (tf=128 -> 3 reduction steps) -> f32 accumulator
    #    with fused finalize.
    _run_case(k4, 2, 64, 128, 384, tf=128)

    print("KERNEL_OK")
</pallas_src>

<mosaic_0001>
module attributes {stable_mosaic.version = 11 : i64} {
  func.func @_ffn_kernel_resident(%arg0: i32, %arg1: memref<256x128xf32, #tpu.memory_space<vmem>>, %arg2: memref<128x512xf32, #tpu.memory_space<vmem>>, %arg3: memref<1x512xf32, #tpu.memory_space<vmem>>, %arg4: memref<512x128xf32, #tpu.memory_space<vmem>>, %arg5: memref<1x128xf32, #tpu.memory_space<vmem>>, %arg6: memref<256x128xf32, #tpu.memory_space<vmem>>) attributes {dimension_semantics = [#tpu.dimension_semantics<parallel>], iteration_bounds = array<i64: 2>, scalar_prefetch = 0 : i64, scratch_operands = 0 : i64, tpu.core_type = #tpu.core_type<tc>, window_params = [{transform_indices = @transform_0, window_bounds = array<i64: 256, 128>}, {pipeline_mode = #tpu.pipeline_mode<synchronous>, transform_indices = @transform_1, window_bounds = array<i64: 128, 512>}, {pipeline_mode = #tpu.pipeline_mode<synchronous>, transform_indices = @transform_2, window_bounds = array<i64: 1, 512>}, {pipeline_mode = #tpu.pipeline_mode<synchronous>, transform_indices = @transform_3, window_bounds = array<i64: 512, 128>}, {pipeline_mode = #tpu.pipeline_mode<synchronous>, transform_indices = @transform_4, window_bounds = array<i64: 1, 128>}, {transform_indices = @transform_5, window_bounds = array<i64: 256, 128>}]} {
    %c0 = arith.constant 0 : index
    %c0_0 = arith.constant 0 : index
    %0 = vector.load %arg1[%c0, %c0_0] : memref<256x128xf32, #tpu.memory_space<vmem>>, vector<256x128xf32>
    %c0_1 = arith.constant 0 : index
    %c0_2 = arith.constant 0 : index
    %1 = vector.load %arg2[%c0_1, %c0_2] : memref<128x512xf32, #tpu.memory_space<vmem>>, vector<128x512xf32>
    %cst = arith.constant dense<0.000000e+00> : vector<256x512xf32>
    %2 = tpu.matmul %0, %1, %cst {dimension_numbers = #tpu.dot_dimension_numbers<[1], [0], [0], [1], [0, 0, 1, 1], [], []>} : vector<256x128xf32>, vector<128x512xf32>, vector<256x512xf32> -> vector<256x512xf32>
    %c0_3 = arith.constant 0 : index
    %c0_4 = arith.constant 0 : index
    %3 = vector.load %arg3[%c0_3, %c0_4] : memref<1x512xf32, #tpu.memory_space<vmem>>, vector<1x512xf32>
    %4 = vector.broadcast %3 : vector<1x512xf32> to vector<256x512xf32>
    %5 = arith.addf %2, %4 : vector<256x512xf32>
    %cst_5 = arith.constant 0.000000e+00 : f32
    %6 = vector.broadcast %cst_5 : f32 to vector<256x512xf32>
    %7 = arith.maximumf %5, %6 : vector<256x512xf32>
    %c0_6 = arith.constant 0 : index
    %c0_7 = arith.constant 0 : index
    %8 = vector.load %arg4[%c0_6, %c0_7] : memref<512x128xf32, #tpu.memory_space<vmem>>, vector<512x128xf32>
    %cst_8 = arith.constant dense<0.000000e+00> : vector<256x128xf32>
    %9 = tpu.matmul %7, %8, %cst_8 {dimension_numbers = #tpu.dot_dimension_numbers<[1], [0], [0], [1], [0, 0, 1, 1], [], []>} : vector<256x512xf32>, vector<512x128xf32>, vector<256x128xf32> -> vector<256x128xf32>
    %c0_9 = arith.constant 0 : index
    %c0_10 = arith.constant 0 : index
    %10 = vector.load %arg5[%c0_9, %c0_10] : memref<1x128xf32, #tpu.memory_space<vmem>>, vector<1x128xf32>
    %11 = vector.broadcast %10 : vector<1x128xf32> to vector<256x128xf32>
    %12 = arith.addf %9, %11 : vector<256x128xf32>
    %c0_11 = arith.constant 0 : index
    %c0_12 = arith.constant 0 : index
    %13 = vector.load %arg6[%c0_11, %c0_12] : memref<256x128xf32, #tpu.memory_space<vmem>>, vector<256x128xf32>
    tpu.vector_store %arg6[%c0_11, %c0_12], %12 {strides = array<i32>} : memref<256x128xf32, #tpu.memory_space<vmem>>, vector<256x128xf32>,
    return
  }
  func.func @transform_0(%arg0: i32) -> (i32, i32) {
    %c0_i32 = arith.constant 0 : i32
    %c0_i32_0 = arith.constant 0 : i32
    return %arg0, %c0_i32 : i32, i32
  }
  func.func @transform_1(%arg0: i32) -> (i32, i32) {
    %c0_i32 = arith.constant 0 : i32
    %c0_i32_0 = arith.constant 0 : i32
    %c0_i32_1 = arith.constant 0 : i32
    return %c0_i32, %c0_i32_0 : i32, i32
  }
  func.func @transform_2(%arg0: i32) -> (i32, i32) {
    %c0_i32 = arith.constant 0 : i32
    %c0_i32_0 = arith.constant 0 : i32
    %c0_i32_1 = arith.constant 0 : i32
    return %c0_i32, %c0_i32_0 : i32, i32
  }
  func.func @transform_3(%arg0: i32) -> (i32, i32) {
    %c0_i32 = arith.constant 0 : i32
    %c0_i32_0 = arith.constant 0 : i32
    %c0_i32_1 = arith.constant 0 : i32
    return %c0_i32, %c0_i32_0 : i32, i32
  }
  func.func @transform_4(%arg0: i32) -> (i32, i32) {
    %c0_i32 = arith.constant 0 : i32
    %c0_i32_0 = arith.constant 0 : i32
    %c0_i32_1 = arith.constant 0 : i32
    return %c0_i32, %c0_i32_0 : i32, i32
  }
  func.func @transform_5(%arg0: i32) -> (i32, i32) {
    %c0_i32 = arith.constant 0 : i32
    %c0_i32_0 = arith.constant 0 : i32
    return %arg0, %c0_i32 : i32, i32
  }
}

</mosaic_0001>

<bundles_post_ra>
// kernel: tpu_custom_call.1
= control target key start
LH: loop header
LB: loop body
LE: loop exit
PB: predicated region body
PF: predicated region fallthrough
CT: control target
= control target key end

     0   :  { %10 = vsyncpa [#allocation3], 0  ;;  %s2625_s0 = inlined_call_operand.hbm [shape: f32[512,128], index: 0, kind: input, shape index: {}]   ;;  %s2626_s1 = inlined_call_operand.hbm [shape: f32[128,512], index: 1, kind: input, shape index: {}]   ;;  %s2627_s2 = inlined_call_operand.hbm [shape: f32[1,512], index: 2, kind: input, shape index: {}]   ;;  %s2628_s3 = inlined_call_operand.hbm [shape: f32[512,128], index: 3, kind: input, shape index: {}]   ;;  %s2629_s4 = inlined_call_operand.vmem [shape: f32[1,128], index: 4, kind: input, shape index: {}]   ;;  %s2630_s5 = inlined_call_operand.hbm [shape: f32[512,128], index: 5, kind: output, shape index: {}]  }
   0x1   :  { %12 = vsyncpa [#allocation3 + $0x1], 0 }
   0x2   :  { %13 = vsyncpa [#allocation6], 0 }
   0x3   :  { %14 = vsyncpa [#allocation9], 0 }
   0x4   :  { %15 = vsyncpa [#allocation4], 0 }
   0x5   :  { %17 = vsyncpa [#allocation4 + $0x1], 0  ;;  %s2045_s18 = smov 0   ;;  %s2047_s19 = smov 0  }
   0x6   :  { %s2049_s20 = smov 0   ;;  %s2051_s21 = smov 0  }
   0x7 LB: > { %s2066_s22 = sadd.s32 4294967295, %s2001_s21   ;;  %s1716_s23 = sadd.s32 4294967294, %s2001_s21   ;;  %s2001_s21 = sphi %s2051_s21, %s2656_s21   ;;  %s1997_s20 = sphi %s2049_s20, %s2655_s20   ;;  %s1993_s19 = sphi %s2047_s19, %s2654_s19   ;;  %s1989_s18 = sphi %s2045_s18, %s2653_s18  }
   0x8   : > { %p43_p0 = scmp.ne.s32.totalorder %s1993_s19, %s1989_s18  ;;  %p2631_p1 = scmp.eq.s32.totalorder %s2066_s22, 0 }
   0x9   : > { %p157_p3 = scmp.eq.s32.totalorder %s1716_s23, 1  ;;  %p1717_p5 = scmp.ge.s32.totalorder %s2001_s21, 1 }
   0xa   : > { %p2075_p4 = por %p2631_p1, %p43_p0  ;;  %p164_p7 = scmp.lt.s32.totalorder %s2001_s21, 3 }
   0xb   : > { %p2080_p6 = por %p157_p3, %p43_p0  ;;  %s2003_s27 = smov [#allocation5]  }
   0xc   : > { %s2636_s24 = scalar_select %p2075_p4, 1, 0 }
   0xd   : > { %s2637_s25 = scalar_select %p2080_p6, 1, 0 }
   0xe   : > { %p2085_p8 = pnand %p1717_p5, %p164_p7  ;;  %s176_s28 = sshll.u32 %s2003_s27, 4  ;;  %s177_s28 = int_to_ptr.vmem [resolvable:$true] %s176_s28 }
   0xf   : > { %s2004_s30 = smov [#allocation7]   ;;  %s2005_s7 = smov [#allocation8]  }
  0x10   : > { %s2638_s26 = scalar_select %p2085_p8, 1, 0 }
  0x11   : > { %p1755_p9 = pneg %p2085_p8  ;;  %s190_s6 = sshll.u32 %s2004_s30, 4  ;;  %s191_s6 = int_to_ptr.vmem [resolvable:$true] %s190_s6 }
  0x12   : > { %s200_s8 = sshll.u32 %s2005_s7, 4  ;;  %s1834_s9 = scalar_lea.vmem %s177_s28, 8192  ;;  %s201_s8 = int_to_ptr.vmem [resolvable:$true] %s200_s8 }
  0x13   : > { %p2094_p11 = pnand %p1755_p9, %p2631_p1  ;;  %p1835_p13 = scmp.ne.s32.totalorder %s177_s28, %s1834_s9 }
  0x14   : > { %p1842_p5 = scmp.lt.s32.totalorder %s177_s28, %s177_s28  ;;  %p1843_p7 = scmp.lt.s32.totalorder %s1834_s9, %s1834_s9 }
  0x15   : > { %p1825_p12 = pneg %p2094_p11 }
  0x16   : > { %p1844_p9 = por %p1843_p7, %p1842_p5 }
  0x17   : > { %p1837_p0 = pnand %p1835_p13, %p1825_p12 }
  0x19   : > { %p1838_p3 = pneg %p1837_p0 }
  0x1b   : > { %p1845_p10 = pnand %p1844_p9, %p1838_p3 }
  0x1d   : > { %1848 = shalt.err (!%p1845_p10)
}
  0x1e   : > { %s2006_s10 = smov 512   ;;  %s2007_s11 = smov 32  }
  0x1f   : > { %1758 = dma.hbm_to_vmem [thread:$0]  (!%p2094_p11), %s2626_s1, 8192, %s177_s28, [#allocation6], %s2006_s10, %s2006_s10, %s2007_s11  }
  0x20   : > { %s1860_s14 = scalar_lea.vmem %s191_s6, 64  ;;  %p1868_p2 = scmp.lt.s32.totalorder %s191_s6, %s191_s6 }
  0x21   : > { %p1861_p1 = scmp.ne.s32.totalorder %s191_s6, %s1860_s14  ;;  %p1869_p6 = scmp.lt.s32.totalorder %s1860_s14, %s1860_s14 }
  0x23   : > { %p1863_p13 = pnand %p1861_p1, %p1825_p12  ;;  %p1870_p5 = por %p1869_p6, %p1868_p2 }
  0x25   : > { %p1864_p0 = pneg %p1863_p13 }
  0x27   : > { %p1871_p3 = pnand %p1870_p5, %p1864_p0 }
  0x29   : > { %1874 = shalt.err (!%p1871_p3)
}
  0x2a   : > { %1761 = dma.hbm_to_vmem [thread:$0]  (!%p2094_p11), %s2627_s2, 64, %s191_s6, [#allocation6]  }
  0x2b   : > { %s1886_s17 = scalar_lea.vmem %s201_s8, 8192  ;;  %p1894_p9 = scmp.lt.s32.totalorder %s201_s8, %s201_s8 }
  0x2c   : > { %p1887_p10 = scmp.ne.s32.totalorder %s201_s8, %s1886_s17  ;;  %p1895_p13 = scmp.lt.s32.totalorder %s1886_s17, %s1886_s17 }
  0x2e   : > { %p1889_p7 = pnand %p1887_p10, %p1825_p12  ;;  %p1896_p4 = por %p1895_p13, %p1894_p9 }
  0x30   : > { %p1890_p1 = pneg %p1889_p7 }
  0x32   : > { %p1897_p2 = pnand %p1896_p4, %p1890_p1 }
  0x34   : > { %1900 = shalt.err (!%p1897_p2)
}
  0x35   : > { %s2633_s23 = smov 128   ;;  %s2009_s27 = smov 8  }
  0x36   : > { %1764 = dma.hbm_to_vmem [thread:$0]  (!%p2094_p11), %s2628_s3, 8192, %s201_s8, [#allocation9], %s2633_s23, %s2633_s23, %s2009_s27  }
  0x37   : > { %s2128_s6 = sadd.s32 1, %s2001_s21   ;;  %s30_s9 = sadd.s32 1, %s1997_s20 }
  0x38   : > { %s27_s7 = ssub.s32 %s2001_s21, %s2128_s6  ;;  %p37_p6 = scmp.ne.s32.totalorder %s1997_s20, %s1993_s19 }
  0x39   : > { %p28_p4 = scmp.eq.s32.totalorder %s27_s7, 0  ;;  %p38_p12 = scmp.eq.s32.totalorder %s2001_s21, 0 }
  0x3a   : > { %p1776_p0 = scmp.lt.s32.totalorder %s2001_s21, 2  ;;  %p2640_p3 = scmp.eq.s32.totalorder %s2066_s22, 1 }
  0x3b   : > { %s2138_s10 = scalar_select %p28_p4, %s1997_s20, %s30_s9  }
  0x3c   : > { %p39_p5 = por %p38_p12, %p37_p6  ;;  %p2142_p10 = por %p2640_p3, %p37_p6 }
  0x3d   : > { %s217_s11 = sand.u32 1, %s1997_s20   ;;  %s1737_s12 = sshll.u32 %s2001_s21, 12 }
  0x3e   : > { %s2641_s29 = scalar_select %p2142_p10, 1, 0 }
  0x3f   : > { %s1722_s8 = sshll.u32 %s217_s11, 8  ;;  %s2151_s15 = scalar_lea.hbm %s2625_s0, %s1737_s12 }
  0x40   : > { %s221_s16 = scalar_lea.vmem [#allocation2], %s1722_s8  ;;  %p2153_p11 = pnand %p1776_p0, %p39_p5 }
  0x41   : > { %s228_s17 = sshll.u32 %s221_s16, 4  ;;  %s2159_s30 = scalar_lea.sflag [#allocation3], %s217_s11  ;;  %s2157_s17 = int_to_ptr.vmem [resolvable:$true] %s228_s17 }
  0x42   : > { %s1901_s7 = scalar_lea.hbm %s2151_s15, 4096  ;;  %p1903_p1 = pneg %p2153_p11 }
  0x43   : > { %p1902_p7 = scmp.ne.s32.totalorder %s2151_s15, %s1901_s7  ;;  %s1906_s8 = scalar_lea.hbm %s2625_s0, 8192 }
  0x44   : > { %p1907_p2 = scmp.lt.s32.totalorder %s2151_s15, %s2625_s0  ;;  %p1908_p4 = scmp.lt.s32.totalorder %s1906_s8, %s1901_s7 }
  0x45   : > { %p1904_p9 = pnand %p1903_p1, %p1902_p7 }
  0x46   : > { %p1909_p6 = por %p1908_p4, %p1907_p2 }
  0x47   : > { %p1905_p13 = pneg %p1904_p9 }
  0x49   : > { %p1910_p12 = pnand %p1909_p6, %p1905_p13 }
  0x4b   : > { %1913 = shalt.err (!%p1910_p12)
}
  0x4c   : > { %s1914_s11 = scalar_lea.vmem %s2157_s17, 4096  ;;  %s2010_s16 = smov [#allocation2]  }
  0x4d   : > { %p1915_p0 = scmp.ne.s32.totalorder %s2157_s17, %s1914_s11  ;;  %s1919_s23 = sshll.u32 %s2010_s16, 4  ;;  %s1920_s23 = int_to_ptr.vmem [resolvable:$false] %s1919_s23 }
  0x4e   : > { %s1921_s9 = scalar_lea.vmem %s1920_s23, 8192  ;;  %p1922_p7 = scmp.lt.s32.totalorder %s2157_s17, %s1920_s23 }
  0x4f   : > { %p1917_p5 = pnand %p1915_p0, %p1903_p1  ;;  %p1923_p9 = scmp.lt.s32.totalorder %s1921_s9, %s1914_s11 }
  0x51   : > { %p1918_p3 = pneg %p1917_p5  ;;  %p1924_p10 = por %p1923_p9, %p1922_p7 }
  0x53   : > { %p1925_p8 = pnand %p1924_p10, %p1918_p3 }
  0x55   : > { %1928 = shalt.err (!%p1925_p8)
}
  0x56   : > { %s2643_s7 = smov 128   ;;  %p2644_p1 = scmp.ne.s32.totalorder %s2638_s26, 0 }
  0x57   : > { %1768 = dma.hbm_to_vmem [thread:$0]  (!%p2153_p11), %s2151_s15, 4096, %s2157_s17, %s2159_s30, %s2643_s7, %s2643_s7, %s2009_s27  }
  0x58   : > { %240 = sbr.rel (%p2644_p1) target bundleno = 669 (0x29d), region = 40  ;;  %s2186_s12 = sand.u32 (!%p2644_p1), 1, %s1993_s19  }
  0x59   : > { %s1726_s23 = sshll.u32 (!%p2644_p1), %s2186_s12, 8  ;;  %s243_s8 = scalar_lea.sflag (!%p2644_p1), [#allocation3], %s2186_s12 }
  0x5a   : > { %s2192_s28 = scalar_lea.vmem (!%p2644_p1), [#allocation2], %s1726_s23  ;;  %p2645_p8 = scmp.ne.s32.totalorder (!%p2644_p1), %s2636_s24, 0 }
  0x5d   : > { %1972 = dma.done.wait (%p2645_p8), %s243_s8, 4096  }
  0x5e   : > { %1974 = vsyncadd (%p2645_p8), %s243_s8, 4294963200  ;;  %p2646_p10 = scmp.eq.s32.totalorder %s2066_s22, 0 }
  0x60   : > { %1976 = dma.done.wait (%p2646_p10), [#allocation6], 8256   ;;  %p2647_p11 = pmov %p2646_p10 }
  0x61   : > { %p2648_p13 = pmov %p2646_p10 }
  0x62   : > { %1978 = vsyncadd (%p2647_p11), [#allocation6], 4294959040 }
  0x63   : > { %1980 = dma.done.wait (%p2648_p13), [#allocation9], 8192   ;;  %p2649_p2 = pmov %p2646_p10 }
  0x64   : > { %v2011_v0 = vmov 0.0   ;;  %v380_v1 = vld [vmem:[#allocation5 + $0x1e8] sm:$0xff]  ;;  %v382_v2 = vld [vmem:[#allocation5 + $0x1f8] sm:$0xff]  ;;  %v379_v3 = vld [vmem:[#allocation5 + $0x1e0] sm:$0xff]  ;;  %s2510_s27 = scalar_lea.vmem [#allocation10], %s1726_s23  ;;  %s1738_s15 = sshll.u32 %s2066_s22, 12 }
  0x65   : > { %1982 = vsyncadd (%p2649_p2), [#allocation9], 4294959104  ;;  %469 = vmatprep.mubr.f32.mxu0 %v2011_v0  ;;  %726 = vmatprep.mubr.f32.mxu1 %v2011_v0  ;;  %v381_v4 = vld [vmem:[#allocation5 + $0x1f0] sm:$0xff]  ;;  %v376_v5 = vld [vmem:[#allocation5 + $0x1c8] sm:$0xff]  ;;  %s1614_s17 = sshll.u32 %s2510_s27, 4  ;;  %s2579_s14 = scalar_lea.hbm %s2630_s5, %s1738_s15  ;;  %s2581_s17 = int_to_ptr.vmem [resolvable:$true] %s1614_s17 }
  0x66   : > { %405 = vmatprep.subr.mxu0 %v380_v1  ;;  %662 = vmatprep.subr.mxu1 %v382_v2  ;;  %v378_v6 = vld [vmem:[#allocation5 + $0x1d8] sm:$0xff]  ;;  %v375_v7 = vld [vmem:[#allocation5 + $0x1c0] sm:$0xff]  ;;  %v377_v8 = vld [vmem:[#allocation5 + $0x1d0] sm:$0xff]  ;;  %s1601_s22 = scalar_lea.sflag [#allocation4], %s2186_s12  ;;  %s1929_s11 = scalar_lea.vmem %s2581_s17, 4096 }
  0x67   : > { %406 = vmatpush1.msra.mxu0 %v379_v3  ;;  %663 = vmatpush1.msra.mxu1 %v381_v4  ;;  %v372_v9 = vld [vmem:[#allocation5 + $0x1a8] sm:$0xff]  ;;  %v374_v10 = vld [vmem:[#allocation5 + $0x1b8] sm:$0xff]  ;;  %v371_v11 = vld [vmem:[#allocation5 + $0x1a0] sm:$0xff]  ;;  %p1930_p4 = scmp.ne.s32.totalorder %s2581_s17, %s1929_s11  ;;  %p2650_p6 = scmp.ne.s32.totalorder %s2641_s29, 0 }
  0x68   : > { %407 = vmatprep.subr.mxu0 %v376_v5  ;;  %664 = vmatprep.subr.mxu1 %v378_v6  ;;  %v373_v12 = vld [vmem:[#allocation5 + $0x1b0] sm:$0xff]  ;;  %v368_v13 = vld [vmem:[#allocation5 + $0x188] sm:$0xff]  ;;  %v370_v14 = vld [vmem:[#allocation5 + $0x198] sm:$0xff]  ;;  %s2012_s16 = smov [#allocation10]  }
  0x69   : > { %408 = vmatpush1.msra.mxu0 %v375_v7  ;;  %665 = vmatpush1.msra.mxu1 %v377_v8  ;;  %v367_v15 = vld [vmem:[#allocation5 + $0x180] sm:$0xff]  ;;  %v369_v16 = vld [vmem:[#allocation5 + $0x190] sm:$0xff]  ;;  %v364_v17 = vld [vmem:[#allocation5 + $0x168] sm:$0xff]  ;;  %p1931_p12 = pnand %p1930_p4, %p2650_p6  ;;  %s1933_s9 = sshll.u32 %s2012_s16, 4  ;;  %s1934_s9 = int_to_ptr.vmem [resolvable:$false] %s1933_s9 }
  0x6a   : > { %409 = vmatprep.subr.mxu0 %v372_v9  ;;  %666 = vmatprep.subr.mxu1 %v374_v10  ;;  %v366_v18 = vld [vmem:[#allocation5 + $0x178] sm:$0xff]  ;;  %v363_v19 = vld [vmem:[#allocation5 + $0x160] sm:$0xff]  ;;  %v365_v20 = vld [vmem:[#allocation5 + $0x170] sm:$0xff]  ;;  %s1935_s7 = scalar_lea.vmem %s1934_s9, 8192  ;;  %p1936_p5 = scmp.lt.s32.totalorder %s2581_s17, %s1934_s9 }
  0x6b   : > { %410 = vmatpush1.msra.mxu0 %v371_v11  ;;  %667 = vmatpush1.msra.mxu1 %v373_v12  ;;  %v360_v21 = vld [vmem:[#allocation5 + $0x148] sm:$0xff]  ;;  %v362_v22 = vld [vmem:[#allocation5 + $0x158] sm:$0xff]  ;;  %v359_v23 = vld [vmem:[#allocation5 + $0x140] sm:$0xff]  ;;  %p1932_p0 = pneg %p1931_p12  ;;  %p1937_p3 = scmp.lt.s32.totalorder %s1935_s7, %s1929_s11 }
  0x6c   : > { %411 = vmatprep.subr.mxu0 %v368_v13  ;;  %668 = vmatprep.subr.mxu1 %v370_v14  ;;  %v361_v24 = vld [vmem:[#allocation5 + $0x150] sm:$0xff]  ;;  %v356_v25 = vld [vmem:[#allocation5 + $0x128] sm:$0xff]  ;;  %v358_v26 = vld [vmem:[#allocation5 + $0x138] sm:$0xff] }
  0x6d   : > { %412 = vmatpush1.msra.mxu0 %v367_v15  ;;  %669 = vmatpush1.msra.mxu1 %v369_v16  ;;  %v355_v27 = vld [vmem:[#allocation5 + $0x120] sm:$0xff]  ;;  %v357_v28 = vld [vmem:[#allocation5 + $0x130] sm:$0xff]  ;;  %v352_v29 = vld [vmem:[#allocation5 + $0x108] sm:$0xff]  ;;  %p1938_p7 = por %p1937_p3, %p1936_p5 }
  0x6e   : > { %413 = vmatprep.subr.mxu0 %v364_v17  ;;  %670 = vmatprep.subr.mxu1 %v366_v18  ;;  %v354_v30 = vld [vmem:[#allocation5 + $0x118] sm:$0xff]  ;;  %v351_v31 = vld [vmem:[#allocation5 + $0x100] sm:$0xff]  ;;  %v353_v32 = vld [vmem:[#allocation5 + $0x110] sm:$0xff] }
  0x6f   : > { %414 = vmatpush1.msra.mxu0 %v363_v19  ;;  %671 = vmatpush1.msra.mxu1 %v365_v20  ;;  %v348_v33 = vld [vmem:[#allocation5 + $0xe8] sm:$0xff]  ;;  %v350_v34 = vld [vmem:[#allocation5 + $0xf8] sm:$0xff]  ;;  %v347_v35 = vld [vmem:[#allocation5 + $0xe0] sm:$0xff]  ;;  %p1939_p9 = pnand %p1938_p7, %p1932_p0 }
  0x70   : > { %415 = vmatprep.subr.mxu0 %v360_v21  ;;  %672 = vmatprep.subr.mxu1 %v362_v22  ;;  %v349_v36 = vld [vmem:[#allocation5 + $0xf0] sm:$0xff]  ;;  %v344_v37 = vld [vmem:[#allocation5 + $0xc8] sm:$0xff]  ;;  %v346_v38 = vld [vmem:[#allocation5 + $0xd8] sm:$0xff] }
  0x71   : > { %416 = vmatpush1.msra.mxu0 %v359_v23  ;;  %673 = vmatpush1.msra.mxu1 %v361_v24  ;;  %v343_v39 = vld [vmem:[#allocation5 + $0xc0] sm:$0xff]  ;;  %v345_v40 = vld [vmem:[#allocation5 + $0xd0] sm:$0xff]  ;;  %v340_v41 = vld [vmem:[#allocation5 + $0xa8] sm:$0xff] }
  0x72   : > { %417 = vmatprep.subr.mxu0 %v356_v25  ;;  %674 = vmatprep.subr.mxu1 %v358_v26  ;;  %v342_v42 = vld [vmem:[#allocation5 + $0xb8] sm:$0xff]  ;;  %v339_v43 = vld [vmem:[#allocation5 + $0xa0] sm:$0xff]  ;;  %v341_v44 = vld [vmem:[#allocation5 + $0xb0] sm:$0xff] }
  0x73   : > { %418 = vmatpush1.msra.mxu0 %v355_v27  ;;  %675 = vmatpush1.msra.mxu1 %v357_v28  ;;  %v336_v45 = vld [vmem:[#allocation5 + $0x88] sm:$0xff]  ;;  %v338_v46 = vld [vmem:[#allocation5 + $0x98] sm:$0xff]  ;;  %v335_v47 = vld [vmem:[#allocation5 + $0x80] sm:$0xff] }
  0x74   : > { %419 = vmatprep.subr.mxu0 %v352_v29  ;;  %676 = vmatprep.subr.mxu1 %v354_v30  ;;  %v337_v48 = vld [vmem:[#allocation5 + $0x90] sm:$0xff]  ;;  %v332_v49 = vld [vmem:[#allocation5 + $0x68] sm:$0xff]  ;;  %v334_v50 = vld [vmem:[#allocation5 + $0x78] sm:$0xff] }
  0x75   : > { %420 = vmatpush1.msra.mxu0 %v351_v31  ;;  %677 = vmatpush1.msra.mxu1 %v353_v32  ;;  %v331_v51 = vld [vmem:[#allocation5 + $0x60] sm:$0xff]  ;;  %v333_v52 = vld [vmem:[#allocation5 + $0x70] sm:$0xff]  ;;  %v328_v53 = vld [vmem:[#allocation5 + $0x48] sm:$0xff] }
  0x76   : > { %421 = vmatprep.subr.mxu0 %v348_v33  ;;  %678 = vmatprep.subr.mxu1 %v350_v34  ;;  %v330_v54 = vld [vmem:[#allocation5 + $0x58] sm:$0xff]  ;;  %v327_v55 = vld [vmem:[#allocation5 + $0x40] sm:$0xff]  ;;  %v329_v56 = vld [vmem:[#allocation5 + $0x50] sm:$0xff] }
  0x77   : > { %422 = vmatpush1.msra.mxu0 %v347_v35  ;;  %679 = vmatpush1.msra.mxu1 %v349_v36  ;;  %v324_v57 = vld [vmem:[#allocation5 + $0x28] sm:$0xff]  ;;  %v326_v58 = vld [vmem:[#allocation5 + $0x38] sm:$0xff]  ;;  %v323_v59 = vld [vmem:[#allocation5 + $0x20] sm:$0xff] }
  0x78   : > { %423 = vmatprep.subr.mxu0 %v344_v37  ;;  %680 = vmatprep.subr.mxu1 %v346_v38  ;;  %v325_v60 = vld [vmem:[#allocation5 + $0x30] sm:$0xff]  ;;  %v320_v61 = vld [vmem:[#allocation5 + $0x8] sm:$0xff]  ;;  %v322_v62 = vld [vmem:[#allocation5 + $0x18] sm:$0xff] }
  0x79   : > { %424 = vmatpush1.msra.mxu0 %v343_v39  ;;  %681 = vmatpush1.msra.mxu1 %v345_v40  ;;  %v319_v63 = vld [vmem:[#allocation5] sm:$0xff]  ;;  %v321_v1 = vld [vmem:[#allocation5 + $0x10] sm:$0xff]  ;;  %v288_v5 = vld [vmem:[%s2192_s28 + $0x8] sm:$0xff] }
  0x7a   : > { %425 = vmatprep.subr.mxu0 %v340_v41  ;;  %682 = vmatprep.subr.mxu1 %v342_v42  ;;  %v287_v2 = vld [vmem:[%s2192_s28] sm:$0xff]  ;;  %v1061_v6 = vld [vmem:[#allocation8 + $0x70] sm:$0xff]  ;;  %v1060_v9 = vld [vmem:[#allocation8 + $0x68] sm:$0xff] }
  0x7b   : > { %426 = vmatpush1.msra.mxu0 %v339_v43  ;;  %683 = vmatpush1.msra.mxu1 %v341_v44  ;;  %v1062_v3 = vld [vmem:[#allocation8 + $0x78] sm:$0xff]  ;;  %v1093_v7 = vld [vmem:[#allocation8 + $0x170] sm:$0xff]  ;;  %v1092_v10 = vld [vmem:[#allocation8 + $0x168] sm:$0xff] }
  0x7c   : > { %427 = vmatprep.subr.mxu0 %v336_v45  ;;  %684 = vmatprep.subr.mxu1 %v338_v46  ;;  %v1094_v4 = vld [vmem:[#allocation8 + $0x178] sm:$0xff]  ;;  %v289_v8 = vld [vmem:[%s2192_s28 + $0x10] sm:$0xff]  ;;  %v1059_v12 = vld [vmem:[#allocation8 + $0x60] sm:$0xff] }
  0x7d   : > { %428 = vmatpush1.msra.mxu0 %v335_v47  ;;  %685 = vmatpush1.msra.mxu1 %v337_v48  ;;  %v290_v11 = vld [vmem:[%s2192_s28 + $0x18] sm:$0xff]  ;;  %v1091_v13 = vld [vmem:[#allocation8 + $0x160] sm:$0xff]  ;;  %v293_v20 = vld [vmem:[%s2192_s28 + $0x30] sm:$0xff] }
  0x7e   : > { %429 = vmatprep.subr.mxu0 %v332_v49  ;;  %686 = vmatprep.subr.mxu1 %v334_v50  ;;  %v291_v14 = vld [vmem:[%s2192_s28 + $0x20] sm:$0xff]  ;;  %v292_v17 = vld [vmem:[%s2192_s28 + $0x28] sm:$0xff]  ;;  %v1057_v18 = vld [vmem:[#allocation8 + $0x50] sm:$0xff] }
  0x7f   : > { %430 = vmatpush1.msra.mxu0 %v331_v51  ;;  %687 = vmatpush1.msra.mxu1 %v333_v52  ;;  %v1058_v15 = vld [vmem:[#allocation8 + $0x58] sm:$0xff]  ;;  %v1089_v19 = vld [vmem:[#allocation8 + $0x150] sm:$0xff]  ;;  %v1056_v21 = vld [vmem:[#allocation8 + $0x48] sm:$0xff] }
  0x80   : > { %431 = vmatprep.subr.mxu0 %v328_v53  ;;  %688 = vmatprep.subr.mxu1 %v330_v54  ;;  %v1090_v16 = vld [vmem:[#allocation8 + $0x158] sm:$0xff]  ;;  %v1088_v22 = vld [vmem:[#allocation8 + $0x148] sm:$0xff]  ;;  %v1055_v24 = vld [vmem:[#allocation8 + $0x40] sm:$0xff] }
  0x81   : > { %432 = vmatpush1.msra.mxu0 %v327_v55  ;;  %689 = vmatpush1.msra.mxu1 %v329_v56  ;;  %v294_v23 = vld [vmem:[%s2192_s28 + $0x38] sm:$0xff]  ;;  %v1087_v25 = vld [vmem:[#allocation8 + $0x140] sm:$0xff]  ;;  %v297_v32 = vld [vmem:[%s2192_s28 + $0x50] sm:$0xff] }
  0x82   : > { %433 = vmatprep.subr.mxu0 %v324_v57  ;;  %690 = vmatprep.subr.mxu1 %v326_v58  ;;  %v295_v26 = vld [vmem:[%s2192_s28 + $0x40] sm:$0xff]  ;;  %v296_v29 = vld [vmem:[%s2192_s28 + $0x48] sm:$0xff]  ;;  %v1053_v30 = vld [vmem:[#allocation8 + $0x30] sm:$0xff] }
  0x83   : > { %434 = vmatpush1.msra.mxu0 %v323_v59  ;;  %691 = vmatpush1.msra.mxu1 %v325_v60  ;;  %v1054_v27 = vld [vmem:[#allocation8 + $0x38] sm:$0xff]  ;;  %v1085_v31 = vld [vmem:[#allocation8 + $0x130] sm:$0xff]  ;;  %v1052_v33 = vld [vmem:[#allocation8 + $0x28] sm:$0xff] }
  0x84   : > { %435 = vmatprep.subr.mxu0 %v320_v61  ;;  %692 = vmatprep.subr.mxu1 %v322_v62  ;;  %v1086_v28 = vld [vmem:[#allocation8 + $0x138] sm:$0xff]  ;;  %v1084_v34 = vld [vmem:[#allocation8 + $0x128] sm:$0xff]  ;;  %v1051_v36 = vld [vmem:[#allocation8 + $0x20] sm:$0xff] }
  0x85   : > { %436 = vmatpush1.msra.mxu0 %v319_v63  ;;  %693 = vmatpush1.msra.mxu1 %v321_v1  ;;  %v298_v35 = vld [vmem:[%s2192_s28 + $0x58] sm:$0xff]  ;;  %v1083_v37 = vld [vmem:[#allocation8 + $0x120] sm:$0xff]  ;;  %v301_v44 = vld [vmem:[%s2192_s28 + $0x70] sm:$0xff] }
  0x86   : > { %470 = vmatmul.mubr.f32.vlgmr.msra.gmra.mxu0 %v287_v2  ;;  %727 = vmatmul.mubr.f32.vlgmr.msra.gmra.mxu1 %v287_v2  ;;  %v299_v38 = vld [vmem:[%s2192_s28 + $0x60] sm:$0xff]  ;;  %v300_v41 = vld [vmem:[%s2192_s28 + $0x68] sm:$0xff]  ;;  %v1049_v42 = vld [vmem:[#allocation8 + $0x10] sm:$0xff] }
  0x87   : > { %475 = vmatprep.mubr.f32.mxu0 %v2011_v0  ;;  %732 = vmatprep.mubr.f32.mxu1 %v2011_v0  ;;  %v1050_v39 = vld [vmem:[#allocation8 + $0x18] sm:$0xff]  ;;  %v1081_v43 = vld [vmem:[#allocation8 + $0x110] sm:$0xff]  ;;  %v1048_v45 = vld [vmem:[#allocation8 + $0x8] sm:$0xff] }
  0x88   : > { %1118 = vmatprep.subr.mxu0 %v2011_v0  ;;  %1343 = vmatprep.subr.mxu1 %v2011_v0  ;;  %v1082_v40 = vld [vmem:[#allocation8 + $0x118] sm:$0xff]  ;;  %v1080_v46 = vld [vmem:[#allocation8 + $0x108] sm:$0xff]  ;;  %v1047_v48 = vld [vmem:[#allocation8] sm:$0xff] }
  0x89   : > { %1119 = vmatpush1.msra.mxu0 %v1062_v3  ;;  %1344 = vmatpush1.msra.mxu1 %v1094_v4  ;;  %v302_v47 = vld [vmem:[%s2192_s28 + $0x78] sm:$0xff]  ;;  %v1079_v49 = vld [vmem:[#allocation8 + $0x100] sm:$0xff]  ;;  %v305_v56 = vld [vmem:[%s2192_s28 + $0x90] sm:$0xff] }
  0x8a   : > { %476 = vmatmul.mubr.f32.gmra.mxu0 %v288_v5  ;;  %733 = vmatmul.mubr.f32.gmra.mxu1 %v288_v5  ;;  %v303_v50 = vld [vmem:[%s2192_s28 + $0x80] sm:$0xff]  ;;  %v304_v53 = vld [vmem:[%s2192_s28 + $0x88] sm:$0xff]  ;;  %v1077_v54 = vld [vmem:[#allocation8 + $0xf0] sm:$0xff] }
  0x8b   : > { %481 = vmatprep.mubr.f32.mxu0 %v2011_v0  ;;  %738 = vmatprep.mubr.f32.mxu1 %v2011_v0  ;;  %v1078_v51 = vld [vmem:[#allocation8 + $0xf8] sm:$0xff]  ;;  %v1109_v55 = vld [vmem:[#allocation8 + $0x1f0] sm:$0xff]  ;;  %v1076_v57 = vld [vmem:[#allocation8 + $0xe8] sm:$0xff] }
  0x8c   : > { %1120 = vmatprep.subr.mxu0 %v2011_v0  ;;  %1345 = vmatprep.subr.mxu1 %v2011_v0  ;;  %v1110_v52 = vld [vmem:[#allocation8 + $0x1f8] sm:$0xff]  ;;  %v1108_v58 = vld [vmem:[#allocation8 + $0x1e8] sm:$0xff]  ;;  %v1075_v60 = vld [vmem:[#allocation8 + $0xe0] sm:$0xff] }
  0x8d   : > { %1121 = vmatpush1.msra.mxu0 %v1061_v6  ;;  %1346 = vmatpush1.msra.mxu1 %v1093_v7  ;;  %v306_v59 = vld [vmem:[%s2192_s28 + $0x98] sm:$0xff]  ;;  %v1107_v61 = vld [vmem:[#allocation8 + $0x1e0] sm:$0xff]  ;;  %v309_v5 = vld [vmem:[%s2192_s28 + $0xb0] sm:$0xff] }
  0x8e   : > { %482 = vmatmul.mubr.f32.gmra.mxu0 %v289_v8  ;;  %739 = vmatmul.mubr.f32.gmra.mxu1 %v289_v8  ;;  %v307_v62 = vld [vmem:[%s2192_s28 + $0xa0] sm:$0xff]  ;;  %v308_v2 = vld [vmem:[%s2192_s28 + $0xa8] sm:$0xff]  ;;  %v1073_v3 = vld [vmem:[#allocation8 + $0xd0] sm:$0xff] }
  0x8f   : > { %487 = vmatprep.mubr.f32.mxu0 %v2011_v0  ;;  %744 = vmatprep.mubr.f32.mxu1 %v2011_v0  ;;  %v1074_v63 = vld [vmem:[#allocation8 + $0xd8] sm:$0xff]  ;;  %v1105_v4 = vld [vmem:[#allocation8 + $0x1d0] sm:$0xff]  ;;  %v1072_v6 = vld [vmem:[#allocation8 + $0xc8] sm:$0xff] }
  0x90   : > { %1122 = vmatprep.subr.mxu0 %v2011_v0  ;;  %1347 = vmatprep.subr.mxu1 %v2011_v0  ;;  %v1106_v1 = vld [vmem:[#allocation8 + $0x1d8] sm:$0xff]  ;;  %v1104_v7 = vld [vmem:[#allocation8 + $0x1c8] sm:$0xff] }
  0x91   : > { %1123 = vmatpush1.msra.mxu0 %v1060_v9  ;;  %1348 = vmatpush1.msra.mxu1 %v1092_v10  ;;  %v310_v8 = vld [vmem:[%s2192_s28 + $0xb8] sm:$0xff]  ;;  %v1071_v9 = vld [vmem:[#allocation8 + $0xc0] sm:$0xff] }
  0x92   : > { %488 = vmatmul.mubr.f32.gmra.mxu0 %v290_v11  ;;  %745 = vmatmul.mubr.f32.gmra.mxu1 %v290_v11  ;;  %v1103_v10 = vld [vmem:[#allocation8 + $0x1c0] sm:$0xff] }
  0x93   : > { %493 = vmatprep.mubr.f32.mxu0 %v2011_v0  ;;  %750 = vmatprep.mubr.f32.mxu1 %v2011_v0  ;;  %v311_v11 = vld [vmem:[%s2192_s28 + $0xc0] sm:$0xff] }
  0x94   : > { %1124 = vmatprep.subr.mxu0 %v2011_v0  ;;  %1349 = vmatprep.subr.mxu1 %v2011_v0 }
  0x95   : > { %1125 = vmatpush1.msra.mxu0 %v1059_v12  ;;  %1350 = vmatpush1.msra.mxu1 %v1091_v13  ;;  %v1070_v12 = vld [vmem:[#allocation8 + $0xb8] sm:$0xff] }
  0x96   : > { %494 = vmatmul.mubr.f32.gmra.mxu0 %v291_v14  ;;  %751 = vmatmul.mubr.f32.gmra.mxu1 %v291_v14  ;;  %v1102_v13 = vld [vmem:[#allocation8 + $0x1b8] sm:$0xff]  ;;  %v312_v14 = vld [vmem:[%s2192_s28 + $0xc8] sm:$0xff] }
  0x97   : > { %499 = vmatprep.mubr.f32.mxu0 %v2011_v0  ;;  %756 = vmatprep.mubr.f32.mxu1 %v2011_v0 }
  0x98   : > { %1126 = vmatprep.subr.mxu0 %v2011_v0  ;;  %1351 = vmatprep.subr.mxu1 %v2011_v0 }
  0x99   : > { %1127 = vmatpush1.msra.mxu0 %v1058_v15  ;;  %1352 = vmatpush1.msra.mxu1 %v1090_v16  ;;  %v1069_v15 = vld [vmem:[#allocation8 + $0xb0] sm:$0xff] }
  0x9a   : > { %500 = vmatmul.mubr.f32.gmra.mxu0 %v292_v17  ;;  %757 = vmatmul.mubr.f32.gmra.mxu1 %v292_v17  ;;  %v1101_v16 = vld [vmem:[#allocation8 + $0x1b0] sm:$0xff] }
  0x9b   : > { %505 = vmatprep.mubr.f32.mxu0 %v2011_v0  ;;  %762 = vmatprep.mubr.f32.mxu1 %v2011_v0  ;;  %v313_v17 = vld [vmem:[%s2192_s28 + $0xd0] sm:$0xff] }
  0x9c   : > { %1128 = vmatprep.subr.mxu0 %v2011_v0  ;;  %1353 = vmatprep.subr.mxu1 %v2011_v0 }
  0x9d   : > { %1129 = vmatpush1.msra.mxu0 %v1057_v18  ;;  %1354 = vmatpush1.msra.mxu1 %v1089_v19  ;;  %v1068_v18 = vld [vmem:[#allocation8 + $0xa8] sm:$0xff] }
  0x9e   : > { %506 = vmatmul.mubr.f32.gmra.mxu0 %v293_v20  ;;  %763 = vmatmul.mubr.f32.gmra.mxu1 %v293_v20  ;;  %v1100_v19 = vld [vmem:[#allocation8 + $0x1a8] sm:$0xff]  ;;  %v314_v20 = vld [vmem:[%s2192_s28 + $0xd8] sm:$0xff] }
  0x9f   : > { %511 = vmatprep.mubr.f32.mxu0 %v2011_v0  ;;  %768 = vmatprep.mubr.f32.mxu1 %v2011_v0 }
  0xa0   : > { %1130 = vmatprep.subr.mxu0 %v2011_v0  ;;  %1355 = vmatprep.subr.mxu1 %v2011_v0 }
  0xa1   : > { %1131 = vmatpush1.msra.mxu0 %v1056_v21  ;;  %1356 = vmatpush1.msra.mxu1 %v1088_v22  ;;  %v1067_v21 = vld [vmem:[#allocation8 + $0xa0] sm:$0xff] }
  0xa2   : > { %512 = vmatmul.mubr.f32.gmra.mxu0 %v294_v23  ;;  %769 = vmatmul.mubr.f32.gmra.mxu1 %v294_v23  ;;  %v1099_v22 = vld [vmem:[#allocation8 + $0x1a0] sm:$0xff] }
  0xa3   : > { %517 = vmatprep.mubr.f32.mxu0 %v2011_v0  ;;  %774 = vmatprep.mubr.f32.mxu1 %v2011_v0  ;;  %v315_v23 = vld [vmem:[%s2192_s28 + $0xe0] sm:$0xff] }
  0xa4   : > { %1132 = vmatprep.subr.mxu0 %v2011_v0  ;;  %1357 = vmatprep.subr.mxu1 %v2011_v0 }
  0xa5   : > { %1133 = vmatpush1.msra.mxu0 %v1055_v24  ;;  %1358 = vmatpush1.msra.mxu1 %v1087_v25  ;;  %v1066_v24 = vld [vmem:[#allocation8 + $0x98] sm:$0xff] }
  0xa6   : > { %518 = vmatmul.mubr.f32.gmra.mxu0 %v295_v26  ;;  %775 = vmatmul.mubr.f32.gmra.mxu1 %v295_v26  ;;  %v1098_v25 = vld [vmem:[#allocation8 + $0x198] sm:$0xff]  ;;  %v316_v26 = vld [vmem:[%s2192_s28 + $0xe8] sm:$0xff] }
  0xa7   : > { %523 = vmatprep.mubr.f32.mxu0 %v2011_v0  ;;  %780 = vmatprep.mubr.f32.mxu1 %v2011_v0 }
  0xa8   : > { %1134 = vmatprep.subr.mxu0 %v2011_v0  ;;  %1359 = vmatprep.subr.mxu1 %v2011_v0 }
  0xa9   : > { %1135 = vmatpush1.msra.mxu0 %v1054_v27  ;;  %1360 = vmatpush1.msra.mxu1 %v1086_v28  ;;  %v1065_v27 = vld [vmem:[#allocation8 + $0x90] sm:$0xff] }
  0xaa   : > { %524 = vmatmul.mubr.f32.gmra.mxu0 %v296_v29  ;;  %781 = vmatmul.mubr.f32.gmra.mxu1 %v296_v29  ;;  %v1097_v28 = vld [vmem:[#allocation8 + $0x190] sm:$0xff] }
  0xab   : > { %529 = vmatprep.mubr.f32.mxu0 %v2011_v0  ;;  %786 = vmatprep.mubr.f32.mxu1 %v2011_v0  ;;  %v317_v29 = vld [vmem:[%s2192_s28 + $0xf0] sm:$0xff] }
  0xac   : > { %1136 = vmatprep.subr.mxu0 %v2011_v0  ;;  %1361 = vmatprep.subr.mxu1 %v2011_v0 }
  0xad   : > { %1137 = vmatpush1.msra.mxu0 %v1053_v30  ;;  %1362 = vmatpush1.msra.mxu1 %v1085_v31  ;;  %v1064_v30 = vld [vmem:[#allocation8 + $0x88] sm:$0xff] }
  0xae   : > { %530 = vmatmul.mubr.f32.gmra.mxu0 %v297_v32  ;;  %787 = vmatmul.mubr.f32.gmra.mxu1 %v297_v32  ;;  %v1096_v31 = vld [vmem:[#allocation8 + $0x188] sm:$0xff]  ;;  %v318_v32 = vld [vmem:[%s2192_s28 + $0xf8] sm:$0xff] }
  0xaf   : > { %535 = vmatprep.mubr.f32.mxu0 %v2011_v0  ;;  %792 = vmatprep.mubr.f32.mxu1 %v2011_v0 }
  0xb0   : > { %1138 = vmatprep.subr.mxu0 %v2011_v0  ;;  %1363 = vmatprep.subr.mxu1 %v2011_v0 }
  0xb1   : > { %1139 = vmatpush1.msra.mxu0 %v1052_v33  ;;  %1364 = vmatpush1.msra.mxu1 %v1084_v34  ;;  %v1063_v33 = vld [vmem:[#allocation8 + $0x80] sm:$0xff] }
  0xb2   : > { %536 = vmatmul.mubr.f32.gmra.mxu0 %v298_v35  ;;  %793 = vmatmul.mubr.f32.gmra.mxu1 %v298_v35  ;;  %v1095_v34 = vld [vmem:[#allocation8 + $0x180] sm:$0xff]  ;;  %v385_v35 = vlaneseq }
  0xb3   : > { %541 = vmatprep.mubr.f32.mxu0 %v2011_v0  ;;  %798 = vmatprep.mubr.f32.mxu1 %v2011_v0 }
  0xb4   : > { %1140 = vmatprep.subr.mxu0 %v2011_v0  ;;  %1365 = vmatprep.subr.mxu1 %v2011_v0 }
  0xb5   : > { %1141 = vmatpush1.msra.mxu0 %v1051_v36  ;;  %1366 = vmatpush1.msra.mxu1 %v1083_v37  ;;  %v386_v36 = vshrl.u32 %v385_v35, 7 }
  0xb6   : > { %542 = vmatmul.mubr.f32.gmra.mxu0 %v299_v38  ;;  %799 = vmatmul.mubr.f32.gmra.mxu1 %v299_v38 }
  0xb7   : > { %547 = vmatprep.mubr.f32.mxu0 %v2011_v0  ;;  %804 = vmatprep.mubr.f32.mxu1 %v2011_v0  ;;  %v395_v37 = vsub.s32 2, %v386_v36  ;;  %v387_v38 = vsub.s32 0, %v386_v36 }
  0xb8   : > { %1142 = vmatprep.subr.mxu0 %v2011_v0  ;;  %1367 = vmatprep.subr.mxu1 %v2011_v0 }
  0xb9   : > { %1143 = vmatpush1.msra.mxu0 %v1050_v39  ;;  %1368 = vmatpush1.msra.mxu1 %v1082_v40  ;;  %v383_v39 = vld [vmem:[#allocation7] sm:$0xf]  ;;  %v391_v40 = vsub.s32 1, %v386_v36 }
  0xba   : > { %548 = vmatmul.mubr.f32.gmra.mxu0 %v300_v41  ;;  %805 = vmatmul.mubr.f32.gmra.mxu1 %v300_v41  ;;  %v399_v41 = vsub.s32 3, %v386_v36 }
  0xbb   : > { %553 = vmatprep.mubr.f32.mxu0 %v2011_v0  ;;  %810 = vmatprep.mubr.f32.mxu1 %v2011_v0 }
  0xbc   : > { %1144 = vmatprep.subr.mxu0 %v2011_v0  ;;  %1369 = vmatprep.subr.mxu1 %v2011_v0 }
  0xbd   : > { %1145 = vmatpush1.msra.mxu0 %v1049_v42  ;;  %1370 = vmatpush1.msra.mxu1 %v1081_v43  ;;  %v2366_v42 = vrot.slane %v383_v39, %v395_v37  ;;  %v2368_v43 = vrot.slane %v383_v39, %v387_v38 }
  0xbe   : > { %554 = vmatmul.mubr.f32.gmra.mxu0 %v301_v44  ;;  %811 = vmatmul.mubr.f32.gmra.mxu1 %v301_v44  ;;  %v2370_v44 = vrot.slane %v383_v39, %v391_v40 }
  0xbf   : > { %559 = vmatprep.mubr.f32.mxu0 %v2011_v0  ;;  %816 = vmatprep.mubr.f32.mxu1 %v2011_v0 }
  0xc0   : > { %1146 = vmatprep.subr.mxu0 %v2011_v0  ;;  %1371 = vmatprep.subr.mxu1 %v2011_v0 }
  0xc1   : > { %1147 = vmatpush1.msra.mxu0 %v1048_v45  ;;  %1372 = vmatpush1.msra.mxu1 %v1080_v46  ;;  %v2372_v45 = vrot.slane %v383_v39, %v399_v41 }
  0xc2   : > { %560 = vmatmul.mubr.f32.gmra.mxu0 %v302_v47  ;;  %817 = vmatmul.mubr.f32.gmra.mxu1 %v302_v47 }
  0xc3   : > { %565 = vmatprep.mubr.f32.mxu0 %v2011_v0  ;;  %822 = vmatprep.mubr.f32.mxu1 %v2011_v0 }
  0xc4   : > { %1148 = vmatprep.subr.mxu0 %v2011_v0  ;;  %1373 = vmatprep.subr.mxu1 %v2011_v0 }
  0xc5   : > { %1149 = vmatpush1.msra.mxu0 %v1047_v48  ;;  %1374 = vmatpush1.msra.mxu1 %v1079_v49 }
  0xc6   : > { %566 = vmatmul.mubr.f32.gmra.mxu0 %v303_v50  ;;  %823 = vmatmul.mubr.f32.gmra.mxu1 %v303_v50 }
  0xc7   : > { %571 = vmatprep.mubr.f32.mxu0 %v2011_v0  ;;  %828 = vmatprep.mubr.f32.mxu1 %v2011_v0 }
  0xc8   : > { %1150 = vmatprep.subr.mxu0 %v2011_v0  ;;  %1375 = vmatprep.subr.mxu1 %v2011_v0 }
  0xc9   : > { %1151 = vmatpush2.msra.mxu0 %v1078_v51  ;;  %1376 = vmatpush2.msra.mxu1 %v1110_v52 }
  0xca   : > { %572 = vmatmul.mubr.f32.gmra.mxu0 %v304_v53  ;;  %829 = vmatmul.mubr.f32.gmra.mxu1 %v304_v53 }
  0xcb   : > { %577 = vmatprep.mubr.f32.mxu0 %v2011_v0  ;;  %834 = vmatprep.mubr.f32.mxu1 %v2011_v0 }
  0xcc   : > { %1152 = vmatprep.subr.mxu0 %v2011_v0  ;;  %1377 = vmatprep.subr.mxu1 %v2011_v0 }
  0xcd   : > { %1153 = vmatpush2.msra.mxu0 %v1077_v54  ;;  %1378 = vmatpush2.msra.mxu1 %v1109_v55 }
  0xce   : > { %578 = vmatmul.mubr.f32.gmra.mxu0 %v305_v56  ;;  %835 = vmatmul.mubr.f32.gmra.mxu1 %v305_v56 }
  0xcf   : > { %583 = vmatprep.mubr.f32.mxu0 %v2011_v0  ;;  %840 = vmatprep.mubr.f32.mxu1 %v2011_v0 }
  0xd0   : > { %1154 = vmatprep.subr.mxu0 %v2011_v0  ;;  %1379 = vmatprep.subr.mxu1 %v2011_v0 }
  0xd1   : > { %1155 = vmatpush2.msra.mxu0 %v1076_v57  ;;  %1380 = vmatpush2.msra.mxu1 %v1108_v58 }
  0xd2   : > { %584 = vmatmul.mubr.f32.gmra.mxu0 %v306_v59  ;;  %841 = vmatmul.mubr.f32.gmra.mxu1 %v306_v59 }
  0xd3   : > { %589 = vmatprep.mubr.f32.mxu0 %v2011_v0  ;;  %846 = vmatprep.mubr.f32.mxu1 %v2011_v0 }
  0xd4   : > { %1156 = vmatprep.subr.mxu0 %v2011_v0  ;;  %1381 = vmatprep.subr.mxu1 %v2011_v0 }
  0xd5   : > { %1157 = vmatpush2.msra.mxu0 %v1075_v60  ;;  %1382 = vmatpush2.msra.mxu1 %v1107_v61 }
  0xd6   : > { %590 = vmatmul.mubr.f32.gmra.mxu0 %v307_v62  ;;  %847 = vmatmul.mubr.f32.gmra.mxu1 %v307_v62 }
  0xd7   : > { %595 = vmatprep.mubr.f32.mxu0 %v2011_v0  ;;  %852 = vmatprep.mubr.f32.mxu1 %v2011_v0 }
  0xd8   : > { %1158 = vmatprep.subr.mxu0 %v2011_v0  ;;  %1383 = vmatprep.subr.mxu1 %v2011_v0 }
  0xd9   : > { %1159 = vmatpush2.msra.mxu0 %v1074_v63  ;;  %1384 = vmatpush2.msra.mxu1 %v1106_v1 }
  0xda   : > { %596 = vmatmul.mubr.f32.gmra.mxu0 %v308_v2  ;;  %853 = vmatmul.mubr.f32.gmra.mxu1 %v308_v2 }
  0xdb   : > { %601 = vmatprep.mubr.f32.mxu0 %v2011_v0  ;;  %858 = vmatprep.mubr.f32.mxu1 %v2011_v0 }
  0xdc   : > { %1160 = vmatprep.subr.mxu0 %v2011_v0  ;;  %1385 = vmatprep.subr.mxu1 %v2011_v0 }
  0xdd   : > { %1161 = vmatpush2.msra.mxu0 %v1073_v3  ;;  %1386 = vmatpush2.msra.mxu1 %v1105_v4 }
  0xde   : > { %602 = vmatmul.mubr.f32.gmra.mxu0 %v309_v5  ;;  %859 = vmatmul.mubr.f32.gmra.mxu1 %v309_v5 }
  0xdf   : > { %607 = vmatprep.mubr.f32.mxu0 %v2011_v0  ;;  %864 = vmatprep.mubr.f32.mxu1 %v2011_v0 }
  0xe0   : > { %1162 = vmatprep.subr.mxu0 %v2011_v0  ;;  %1387 = vmatprep.subr.mxu1 %v2011_v0 }
  0xe1   : > { %1163 = vmatpush2.msra.mxu0 %v1072_v6  ;;  %1388 = vmatpush2.msra.mxu1 %v1104_v7 }
  0xe2   : > { %608 = vmatmul.mubr.f32.gmra.mxu0 %v310_v8  ;;  %865 = vmatmul.mubr.f32.gmra.mxu1 %v310_v8 }
  0xe3   : > { %613 = vmatprep.mubr.f32.mxu0 %v2011_v0  ;;  %870 = vmatprep.mubr.f32.mxu1 %v2011_v0 }
  0xe4   : > { %1164 = vmatprep.subr.mxu0 %v2011_v0  ;;  %1389 = vmatprep.subr.mxu1 %v2011_v0 }
  0xe5   : > { %1165 = vmatpush2.msra.mxu0 %v1071_v9  ;;  %1390 = vmatpush2.msra.mxu1 %v1103_v10 }
  0xe6   : > { %614 = vmatmul.mubr.f32.gmra.mxu0 %v311_v11  ;;  %871 = vmatmul.mubr.f32.gmra.mxu1 %v311_v11 }
  0xe7   : > { %619 = vmatprep.mubr.f32.mxu0 %v2011_v0  ;;  %876 = vmatprep.mubr.f32.mxu1 %v2011_v0 }
  0xe8   : > { %1166 = vmatprep.subr.mxu0 %v2011_v0  ;;  %1391 = vmatprep.subr.mxu1 %v2011_v0 }
  0xe9   : > { %1167 = vmatpush2.msra.mxu0 %v1070_v12  ;;  %1392 = vmatpush2.msra.mxu1 %v1102_v13 }
  0xea   : > { %620 = vmatmul.mubr.f32.gmra.mxu0 %v312_v14  ;;  %877 = vmatmul.mubr.f32.gmra.mxu1 %v312_v14 }
  0xeb   : > { %625 = vmatprep.mubr.f32.mxu0 %v2011_v0  ;;  %882 = vmatprep.mubr.f32.mxu1 %v2011_v0 }
  0xec   : > { %1168 = vmatprep.subr.mxu0 %v2011_v0  ;;  %1393 = vmatprep.subr.mxu1 %v2011_v0 }
  0xed   : > { %1169 = vmatpush2.msra.mxu0 %v1069_v15  ;;  %1394 = vmatpush2.msra.mxu1 %v1101_v16 }
  0xee   : > { %626 = vmatmul.mubr.f32.gmra.mxu0 %v313_v17  ;;  %883 = vmatmul.mubr.f32.gmra.mxu1 %v313_v17 }
  0xef   : > { %631 = vmatprep.mubr.f32.mxu0 %v2011_v0  ;;  %888 = vmatprep.mubr.f32.mxu1 %v2011_v0 }
  0xf0   : > { %1170 = vmatprep.subr.mxu0 %v2011_v0  ;;  %1395 = vmatprep.subr.mxu1 %v2011_v0 }
  0xf1   : > { %1171 = vmatpush2.msra.mxu0 %v1068_v18  ;;  %1396 = vmatpush2.msra.mxu1 %v1100_v19 }
  0xf2   : > { %632 = vmatmul.mubr.f32.gmra.mxu0 %v314_v20  ;;  %889 = vmatmul.mubr.f32.gmra.mxu1 %v314_v20 }
  0xf3   : > { %637 = vmatprep.mubr.f32.mxu0 %v2011_v0  ;;  %894 = vmatprep.mubr.f32.mxu1 %v2011_v0 }
  0xf4   : > { %1172 = vmatprep.subr.mxu0 %v2011_v0  ;;  %1397 = vmatprep.subr.mxu1 %v2011_v0 }
  0xf5   : > { %1173 = vmatpush2.msra.mxu0 %v1067_v21  ;;  %1398 = vmatpush2.msra.mxu1 %v1099_v22 }
  0xf6   : > { %638 = vmatmul.mubr.f32.gmra.mxu0 %v315_v23  ;;  %895 = vmatmul.mubr.f32.gmra.mxu1 %v315_v23 }
  0xf7   : > { %643 = vmatprep.mubr.f32.mxu0 %v2011_v0  ;;  %900 = vmatprep.mubr.f32.mxu1 %v2011_v0 }
  0xf8   : > { %1174 = vmatprep.subr.mxu0 %v2011_v0  ;;  %1399 = vmatprep.subr.mxu1 %v2011_v0 }
  0xf9   : > { %1175 = vmatpush2.msra.mxu0 %v1066_v24  ;;  %1400 = vmatpush2.msra.mxu1 %v1098_v25 }
  0xfa   : > { %644 = vmatmul.mubr.f32.gmra.mxu0 %v316_v26  ;;  %901 = vmatmul.mubr.f32.gmra.mxu1 %v316_v26 }
  0xfb   : > { %649 = vmatprep.mubr.f32.mxu0 %v2011_v0  ;;  %906 = vmatprep.mubr.f32.mxu1 %v2011_v0 }
  0xfc   : > { %1176 = vmatprep.subr.mxu0 %v2011_v0  ;;  %1401 = vmatprep.subr.mxu1 %v2011_v0 }
  0xfd   : > { %1177 = vmatpush2.msra.mxu0 %v1065_v27  ;;  %1402 = vmatpush2.msra.mxu1 %v1097_v28 }
  0xfe   : > { %650 = vmatmul.mubr.f32.gmra.mxu0 %v317_v29  ;;  %907 = vmatmul.mubr.f32.gmra.mxu1 %v317_v29 }
  0xff   : > { %655 = vmatprep.mubr.f32.mxu0 %v2011_v0  ;;  %912 = vmatprep.mubr.f32.mxu1 %v2011_v0 }
 0x100   : > { %1178 = vmatprep.subr.mxu0 %v2011_v0  ;;  %1403 = vmatprep.subr.mxu1 %v2011_v0 }
 0x101   : > { %1179 = vmatpush2.msra.mxu0 %v1064_v30  ;;  %1404 = vmatpush2.msra.mxu1 %v1096_v31 }
 0x102   : > { %656 = vmatmul.mubr.f32.gmra.mxu0 %v318_v32  ;;  %913 = vmatmul.mubr.f32.gmra.mxu1 %v318_v32 }
 0x103   : > { %1180 = vmatprep.subr.mxu0 %v2011_v0  ;;  %1405 = vmatprep.subr.mxu1 %v2011_v0 }
 0x104   : > { %1181 = vmatpush2.msra.mxu0 %v1063_v33  ;;  %1406 = vmatpush2.msra.mxu1 %v1095_v34 }
 0x146   : > { %v471_v46 = vpop.f32.mrf.mxu0  ;;  %v728_v47 = vpop.f32.mrf.mxu1 }
 0x147   : > { %v729_v0 = vadd.f32 %v728_v47, %v2366_v42  ;;  %v472_v48 = vadd.f32 %v471_v46, %v2368_v43 }
 0x148   : > { %v473_v49 = vpop.f32.mrf.mxu0  ;;  %v730_v50 = vpop.f32.mrf.mxu1 }
 0x149   : > { %v474_v51 = vadd.f32 %v473_v49, %v2370_v44  ;;  %v731_v52 = vadd.f32 %v730_v50, %v2372_v45  ;;  %v921_v53 = vmax.f32 %v729_v0, 0.0  ;;  %v919_v59 = vmax.f32 %v472_v48, 0.0 }
 0x14a   : > { %v477_v54 = vpop.f32.mrf.mxu0  ;;  %v734_v55 = vpop.f32.mrf.mxu1 }
 0x14b   : > { %v920_v56 = vmax.f32 %v474_v51, 0.0  ;;  %v922_v57 = vmax.f32 %v731_v52, 0.0  ;;  %v735_v58 = vadd.f32 %v734_v55, %v2366_v42  ;;  %v478_v60 = vadd.f32 %v477_v54, %v2368_v43 }
 0x14c   : > { %v479_v61 = vpop.f32.mrf.mxu0  ;;  %v736_v62 = vpop.f32.mrf.mxu1 }
 0x14d   : > { %v480_v63 = vadd.f32 %v479_v61, %v2370_v44  ;;  %v737_v1 = vadd.f32 %v736_v62, %v2372_v45  ;;  %1182 = vmatprep.mubr.f32.mxu0 %v920_v56  ;;  %1407 = vmatprep.mubr.f32.mxu1 %v922_v57  ;;  %v925_v2 = vmax.f32 %v735_v58, 0.0  ;;  %v923_v8 = vmax.f32 %v478_v60, 0.0 }
 0x14e   : > { %v483_v3 = vpop.f32.mrf.mxu0  ;;  %v740_v4 = vpop.f32.mrf.mxu1  ;;  %1183 = vmatmul.mubr.f32.vlgmr.msra.gmra.mxu0 %v919_v59  ;;  %1408 = vmatmul.mubr.f32.vlgmr.msra.gmra.mxu1 %v921_v53 }
 0x14f   : > { %v924_v5 = vmax.f32 %v480_v63, 0.0  ;;  %v926_v6 = vmax.f32 %v737_v1, 0.0  ;;  %v741_v7 = vadd.f32 %v740_v4, %v2366_v42  ;;  %v484_v9 = vadd.f32 %v483_v3, %v2368_v43 }
 0x150   : > { %v485_v10 = vpop.f32.mrf.mxu0  ;;  %v742_v11 = vpop.f32.mrf.mxu1 }
 0x151   : > { %v486_v12 = vadd.f32 %v485_v10, %v2370_v44  ;;  %v743_v13 = vadd.f32 %v742_v11, %v2372_v45  ;;  %1187 = vmatprep.mubr.f32.mxu0 %v924_v5  ;;  %1412 = vmatprep.mubr.f32.mxu1 %v926_v6  ;;  %v929_v14 = vmax.f32 %v741_v7, 0.0  ;;  %v927_v20 = vmax.f32 %v484_v9, 0.0 }
 0x152   : > { %v489_v15 = vpop.f32.mrf.mxu0  ;;  %v746_v16 = vpop.f32.mrf.mxu1  ;;  %1188 = vmatmul.mubr.f32.gmra.mxu0 %v923_v8  ;;  %1413 = vmatmul.mubr.f32.gmra.mxu1 %v925_v2 }
 0x153   : > { %v928_v17 = vmax.f32 %v486_v12, 0.0  ;;  %v930_v18 = vmax.f32 %v743_v13, 0.0  ;;  %v747_v19 = vadd.f32 %v746_v16, %v2366_v42  ;;  %v490_v21 = vadd.f32 %v489_v15, %v2368_v43 }
 0x154   : > { %v491_v22 = vpop.f32.mrf.mxu0  ;;  %v748_v23 = vpop.f32.mrf.mxu1 }
 0x155   : > { %v492_v24 = vadd.f32 %v491_v22, %v2370_v44  ;;  %v749_v25 = vadd.f32 %v748_v23, %v2372_v45  ;;  %1192 = vmatprep.mubr.f32.mxu0 %v928_v17  ;;  %1417 = vmatprep.mubr.f32.mxu1 %v930_v18  ;;  %v933_v26 = vmax.f32 %v747_v19, 0.0  ;;  %v931_v32 = vmax.f32 %v490_v21, 0.0 }
 0x156   : > { %v495_v27 = vpop.f32.mrf.mxu0  ;;  %v752_v28 = vpop.f32.mrf.mxu1  ;;  %1193 = vmatmul.mubr.f32.gmra.mxu0 %v927_v20  ;;  %1418 = vmatmul.mubr.f32.gmra.mxu1 %v929_v14 }
 0x157   : > { %v932_v29 = vmax.f32 %v492_v24, 0.0  ;;  %v934_v30 = vmax.f32 %v749_v25, 0.0  ;;  %v753_v31 = vadd.f32 %v752_v28, %v2366_v42  ;;  %v496_v33 = vadd.f32 %v495_v27, %v2368_v43 }
 0x158   : > { %v497_v34 = vpop.f32.mrf.mxu0  ;;  %v754_v35 = vpop.f32.mrf.mxu1 }
 0x159   : > { %v498_v36 = vadd.f32 %v497_v34, %v2370_v44  ;;  %v755_v37 = vadd.f32 %v754_v35, %v2372_v45  ;;  %1197 = vmatprep.mubr.f32.mxu0 %v932_v29  ;;  %1422 = vmatprep.mubr.f32.mxu1 %v934_v30  ;;  %v937_v38 = vmax.f32 %v753_v31, 0.0  ;;  %v935_v0 = vmax.f32 %v496_v33, 0.0 }
 0x15a   : > { %v501_v39 = vpop.f32.mrf.mxu0  ;;  %v758_v40 = vpop.f32.mrf.mxu1  ;;  %1198 = vmatmul.mubr.f32.gmra.mxu0 %v931_v32  ;;  %1423 = vmatmul.mubr.f32.gmra.mxu1 %v933_v26 }
 0x15b   : > { %v936_v41 = vmax.f32 %v498_v36, 0.0  ;;  %v938_v46 = vmax.f32 %v755_v37, 0.0  ;;  %v759_v47 = vadd.f32 %v758_v40, %v2366_v42  ;;  %v502_v48 = vadd.f32 %v501_v39, %v2368_v43 }
 0x15c   : > { %v503_v49 = vpop.f32.mrf.mxu0  ;;  %v760_v50 = vpop.f32.mrf.mxu1 }
 0x15d   : > { %v504_v51 = vadd.f32 %v503_v49, %v2370_v44  ;;  %v761_v52 = vadd.f32 %v760_v50, %v2372_v45  ;;  %1202 = vmatprep.mubr.f32.mxu0 %v936_v41  ;;  %1427 = vmatprep.mubr.f32.mxu1 %v938_v46  ;;  %v941_v53 = vmax.f32 %v759_v47, 0.0  ;;  %v939_v59 = vmax.f32 %v502_v48, 0.0 }
 0x15e   : > { %v507_v54 = vpop.f32.mrf.mxu0  ;;  %v764_v55 = vpop.f32.mrf.mxu1  ;;  %1203 = vmatmul.mubr.f32.gmra.mxu0 %v935_v0  ;;  %1428 = vmatmul.mubr.f32.gmra.mxu1 %v937_v38 }
 0x15f   : > { %v940_v56 = vmax.f32 %v504_v51, 0.0  ;;  %v942_v57 = vmax.f32 %v761_v52, 0.0  ;;  %v765_v58 = vadd.f32 %v764_v55, %v2366_v42  ;;  %v508_v60 = vadd.f32 %v507_v54, %v2368_v43 }
 0x160   : > { %v509_v61 = vpop.f32.mrf.mxu0  ;;  %v766_v62 = vpop.f32.mrf.mxu1 }
 0x161   : > { %v510_v63 = vadd.f32 %v509_v61, %v2370_v44  ;;  %v767_v1 = vadd.f32 %v766_v62, %v2372_v45  ;;  %1207 = vmatprep.mubr.f32.mxu0 %v940_v56  ;;  %1432 = vmatprep.mubr.f32.mxu1 %v942_v57  ;;  %v945_v2 = vmax.f32 %v765_v58, 0.0  ;;  %v943_v8 = vmax.f32 %v508_v60, 0.0 }
 0x162   : > { %v513_v3 = vpop.f32.mrf.mxu0  ;;  %v770_v4 = vpop.f32.mrf.mxu1  ;;  %1208 = vmatmul.mubr.f32.gmra.mxu0 %v939_v59  ;;  %1433 = vmatmul.mubr.f32.gmra.mxu1 %v941_v53 }
 0x163   : > { %v944_v5 = vmax.f32 %v510_v63, 0.0  ;;  %v946_v6 = vmax.f32 %v767_v1, 0.0  ;;  %v771_v7 = vadd.f32 %v770_v4, %v2366_v42  ;;  %v514_v9 = vadd.f32 %v513_v3, %v2368_v43 }
 0x164   : > { %v515_v10 = vpop.f32.mrf.mxu0  ;;  %v772_v11 = vpop.f32.mrf.mxu1 }
 0x165   : > { %v516_v12 = vadd.f32 %v515_v10, %v2370_v44  ;;  %v773_v13 = vadd.f32 %v772_v11, %v2372_v45  ;;  %1212 = vmatprep.mubr.f32.mxu0 %v944_v5  ;;  %1437 = vmatprep.mubr.f32.mxu1 %v946_v6  ;;  %v949_v14 = vmax.f32 %v771_v7, 0.0  ;;  %v947_v20 = vmax.f32 %v514_v9, 0.0 }
 0x166   : > { %v519_v15 = vpop.f32.mrf.mxu0  ;;  %v776_v16 = vpop.f32.mrf.mxu1  ;;  %1213 = vmatmul.mubr.f32.gmra.mxu0 %v943_v8  ;;  %1438 = vmatmul.mubr.f32.gmra.mxu1 %v945_v2 }
 0x167   : > { %v948_v17 = vmax.f32 %v516_v12, 0.0  ;;  %v950_v18 = vmax.f32 %v773_v13, 0.0  ;;  %v777_v19 = vadd.f32 %v776_v16, %v2366_v42  ;;  %v520_v21 = vadd.f32 %v519_v15, %v2368_v43 }
 0x168   : > { %v521_v22 = vpop.f32.mrf.mxu0  ;;  %v778_v23 = vpop.f32.mrf.mxu1 }
 0x169   : > { %v522_v24 = vadd.f32 %v521_v22, %v2370_v44  ;;  %v779_v25 = vadd.f32 %v778_v23, %v2372_v45  ;;  %1217 = vmatprep.mubr.f32.mxu0 %v948_v17  ;;  %1442 = vmatprep.mubr.f32.mxu1 %v950_v18  ;;  %v953_v26 = vmax.f32 %v777_v19, 0.0  ;;  %v951_v32 = vmax.f32 %v520_v21, 0.0 }
 0x16a   : > { %v525_v27 = vpop.f32.mrf.mxu0  ;;  %v782_v28 = vpop.f32.mrf.mxu1  ;;  %1218 = vmatmul.mubr.f32.gmra.mxu0 %v947_v20  ;;  %1443 = vmatmul.mubr.f32.gmra.mxu1 %v949_v14 }
 0x16b   : > { %v952_v29 = vmax.f32 %v522_v24, 0.0  ;;  %v954_v30 = vmax.f32 %v779_v25, 0.0  ;;  %v783_v31 = vadd.f32 %v782_v28, %v2366_v42  ;;  %v526_v33 = vadd.f32 %v525_v27, %v2368_v43 }
 0x16c   : > { %v527_v34 = vpop.f32.mrf.mxu0  ;;  %v784_v35 = vpop.f32.mrf.mxu1 }
 0x16d   : > { %v528_v36 = vadd.f32 %v527_v34, %v2370_v44  ;;  %v785_v37 = vadd.f32 %v784_v35, %v2372_v45  ;;  %1222 = vmatprep.mubr.f32.mxu0 %v952_v29  ;;  %1447 = vmatprep.mubr.f32.mxu1 %v954_v30  ;;  %v957_v38 = vmax.f32 %v783_v31, 0.0  ;;  %v955_v0 = vmax.f32 %v526_v33, 0.0 }
 0x16e   : > { %v531_v39 = vpop.f32.mrf.mxu0  ;;  %v788_v40 = vpop.f32.mrf.mxu1  ;;  %1223 = vmatmul.mubr.f32.gmra.mxu0 %v951_v32  ;;  %1448 = vmatmul.mubr.f32.gmra.mxu1 %v953_v26 }
 0x16f   : > { %v956_v41 = vmax.f32 %v528_v36, 0.0  ;;  %v958_v46 = vmax.f32 %v785_v37, 0.0  ;;  %v789_v47 = vadd.f32 %v788_v40, %v2366_v42  ;;  %v532_v48 = vadd.f32 %v531_v39, %v2368_v43 }
 0x170   : > { %v533_v49 = vpop.f32.mrf.mxu0  ;;  %v790_v50 = vpop.f32.mrf.mxu1 }
 0x171   : > { %v534_v51 = vadd.f32 %v533_v49, %v2370_v44  ;;  %v791_v52 = vadd.f32 %v790_v50, %v2372_v45  ;;  %1227 = vmatprep.mubr.f32.mxu0 %v956_v41  ;;  %1452 = vmatprep.mubr.f32.mxu1 %v958_v46  ;;  %v961_v53 = vmax.f32 %v789_v47, 0.0  ;;  %v959_v59 = vmax.f32 %v532_v48, 0.0 }
 0x172   : > { %v537_v54 = vpop.f32.mrf.mxu0  ;;  %v794_v55 = vpop.f32.mrf.mxu1  ;;  %1228 = vmatmul.mubr.f32.gmra.mxu0 %v955_v0  ;;  %1453 = vmatmul.mubr.f32.gmra.mxu1 %v957_v38 }
 0x173   : > { %v960_v56 = vmax.f32 %v534_v51, 0.0  ;;  %v962_v57 = vmax.f32 %v791_v52, 0.0  ;;  %v795_v58 = vadd.f32 %v794_v55, %v2366_v42  ;;  %v538_v60 = vadd.f32 %v537_v54, %v2368_v43 }
 0x174   : > { %v539_v61 = vpop.f32.mrf.mxu0  ;;  %v796_v62 = vpop.f32.mrf.mxu1 }
 0x175   : > { %v540_v63 = vadd.f32 %v539_v61, %v2370_v44  ;;  %v797_v1 = vadd.f32 %v796_v62, %v2372_v45  ;;  %1232 = vmatprep.mubr.f32.mxu0 %v960_v56  ;;  %1457 = vmatprep.mubr.f32.mxu1 %v962_v57  ;;  %v965_v2 = vmax.f32 %v795_v58, 0.0  ;;  %v963_v8 = vmax.f32 %v538_v60, 0.0 }
 0x176   : > { %v543_v3 = vpop.f32.mrf.mxu0  ;;  %v800_v4 = vpop.f32.mrf.mxu1  ;;  %1233 = vmatmul.mubr.f32.gmra.mxu0 %v959_v59  ;;  %1458 = vmatmul.mubr.f32.gmra.mxu1 %v961_v53 }
 0x177   : > { %v964_v5 = vmax.f32 %v540_v63, 0.0  ;;  %v966_v6 = vmax.f32 %v797_v1, 0.0  ;;  %v801_v7 = vadd.f32 %v800_v4, %v2366_v42  ;;  %v544_v9 = vadd.f32 %v543_v3, %v2368_v43 }
 0x178   : > { %v545_v10 = vpop.f32.mrf.mxu0  ;;  %v802_v11 = vpop.f32.mrf.mxu1 }
 0x179   : > { %v546_v12 = vadd.f32 %v545_v10, %v2370_v44  ;;  %v803_v13 = vadd.f32 %v802_v11, %v2372_v45  ;;  %1237 = vmatprep.mubr.f32.mxu0 %v964_v5  ;;  %1462 = vmatprep.mubr.f32.mxu1 %v966_v6  ;;  %v969_v14 = vmax.f32 %v801_v7, 0.0  ;;  %v967_v20 = vmax.f32 %v544_v9, 0.0 }
 0x17a   : > { %v549_v15 = vpop.f32.mrf.mxu0  ;;  %v806_v16 = vpop.f32.mrf.mxu1  ;;  %1238 = vmatmul.mubr.f32.gmra.mxu0 %v963_v8  ;;  %1463 = vmatmul.mubr.f32.gmra.mxu1 %v965_v2 }
 0x17b   : > { %v968_v17 = vmax.f32 %v546_v12, 0.0  ;;  %v970_v18 = vmax.f32 %v803_v13, 0.0  ;;  %v807_v19 = vadd.f32 %v806_v16, %v2366_v42  ;;  %v550_v21 = vadd.f32 %v549_v15, %v2368_v43 }
 0x17c   : > { %v551_v22 = vpop.f32.mrf.mxu0  ;;  %v808_v23 = vpop.f32.mrf.mxu1 }
 0x17d   : > { %v552_v24 = vadd.f32 %v551_v22, %v2370_v44  ;;  %v809_v25 = vadd.f32 %v808_v23, %v2372_v45  ;;  %1242 = vmatprep.mubr.f32.mxu0 %v968_v17  ;;  %1467 = vmatprep.mubr.f32.mxu1 %v970_v18  ;;  %v973_v26 = vmax.f32 %v807_v19, 0.0  ;;  %v971_v32 = vmax.f32 %v550_v21, 0.0 }
 0x17e   : > { %v555_v27 = vpop.f32.mrf.mxu0  ;;  %v812_v28 = vpop.f32.mrf.mxu1  ;;  %1243 = vmatmul.mubr.f32.gmra.mxu0 %v967_v20  ;;  %1468 = vmatmul.mubr.f32.gmra.mxu1 %v969_v14 }
 0x17f   : > { %v972_v29 = vmax.f32 %v552_v24, 0.0  ;;  %v974_v30 = vmax.f32 %v809_v25, 0.0  ;;  %v813_v31 = vadd.f32 %v812_v28, %v2366_v42  ;;  %v556_v33 = vadd.f32 %v555_v27, %v2368_v43 }
 0x180   : > { %v557_v34 = vpop.f32.mrf.mxu0  ;;  %v814_v35 = vpop.f32.mrf.mxu1 }
 0x181   : > { %v558_v36 = vadd.f32 %v557_v34, %v2370_v44  ;;  %v815_v37 = vadd.f32 %v814_v35, %v2372_v45  ;;  %1247 = vmatprep.mubr.f32.mxu0 %v972_v29  ;;  %1472 = vmatprep.mubr.f32.mxu1 %v974_v30  ;;  %v977_v38 = vmax.f32 %v813_v31, 0.0  ;;  %v975_v0 = vmax.f32 %v556_v33, 0.0 }
 0x182   : > { %v561_v39 = vpop.f32.mrf.mxu0  ;;  %v818_v40 = vpop.f32.mrf.mxu1  ;;  %1248 = vmatmul.mubr.f32.gmra.mxu0 %v971_v32  ;;  %1473 = vmatmul.mubr.f32.gmra.mxu1 %v973_v26 }
 0x183   : > { %v976_v41 = vmax.f32 %v558_v36, 0.0  ;;  %v978_v46 = vmax.f32 %v815_v37, 0.0  ;;  %v819_v47 = vadd.f32 %v818_v40, %v2366_v42  ;;  %v562_v48 = vadd.f32 %v561_v39, %v2368_v43 }
 0x184   : > { %v563_v49 = vpop.f32.mrf.mxu0  ;;  %v820_v50 = vpop.f32.mrf.mxu1 }
 0x185   : > { %v564_v51 = vadd.f32 %v563_v49, %v2370_v44  ;;  %v821_v52 = vadd.f32 %v820_v50, %v2372_v45  ;;  %1252 = vmatprep.mubr.f32.mxu0 %v976_v41  ;;  %1477 = vmatprep.mubr.f32.mxu1 %v978_v46  ;;  %v981_v53 = vmax.f32 %v819_v47, 0.0  ;;  %v979_v59 = vmax.f32 %v562_v48, 0.0 }
 0x186   : > { %v567_v54 = vpop.f32.mrf.mxu0  ;;  %v824_v55 = vpop.f32.mrf.mxu1  ;;  %1253 = vmatmul.mubr.f32.gmra.mxu0 %v975_v0  ;;  %1478 = vmatmul.mubr.f32.gmra.mxu1 %v977_v38 }
 0x187   : > { %v980_v56 = vmax.f32 %v564_v51, 0.0  ;;  %v982_v57 = vmax.f32 %v821_v52, 0.0  ;;  %v825_v58 = vadd.f32 %v824_v55, %v2366_v42  ;;  %v568_v60 = vadd.f32 %v567_v54, %v2368_v43 }
 0x188   : > { %v569_v61 = vpop.f32.mrf.mxu0  ;;  %v826_v62 = vpop.f32.mrf.mxu1 }
 0x189   : > { %v570_v63 = vadd.f32 %v569_v61, %v2370_v44  ;;  %v827_v1 = vadd.f32 %v826_v62, %v2372_v45  ;;  %1257 = vmatprep.mubr.f32.mxu0 %v980_v56  ;;  %1482 = vmatprep.mubr.f32.mxu1 %v982_v57  ;;  %v985_v2 = vmax.f32 %v825_v58, 0.0  ;;  %v983_v8 = vmax.f32 %v568_v60, 0.0 }
 0x18a   : > { %v573_v3 = vpop.f32.mrf.mxu0  ;;  %v830_v4 = vpop.f32.mrf.mxu1  ;;  %1258 = vmatmul.mubr.f32.gmra.mxu0 %v979_v59  ;;  %1483 = vmatmul.mubr.f32.gmra.mxu1 %v981_v53 }
 0x18b   : > { %v984_v5 = vmax.f32 %v570_v63, 0.0  ;;  %v986_v6 = vmax.f32 %v827_v1, 0.0  ;;  %v831_v7 = vadd.f32 %v830_v4, %v2366_v42  ;;  %v574_v9 = vadd.f32 %v573_v3, %v2368_v43 }
 0x18c   : > { %v575_v10 = vpop.f32.mrf.mxu0  ;;  %v832_v11 = vpop.f32.mrf.mxu1 }
 0x18d   : > { %v576_v12 = vadd.f32 %v575_v10, %v2370_v44  ;;  %v833_v13 = vadd.f32 %v832_v11, %v2372_v45  ;;  %1262 = vmatprep.mubr.f32.mxu0 %v984_v5  ;;  %1487 = vmatprep.mubr.f32.mxu1 %v986_v6  ;;  %v989_v14 = vmax.f32 %v831_v7, 0.0  ;;  %v987_v20 = vmax.f32 %v574_v9, 0.0 }
 0x18e   : > { %v579_v15 = vpop.f32.mrf.mxu0  ;;  %v836_v16 = vpop.f32.mrf.mxu1  ;;  %1263 = vmatmul.mubr.f32.gmra.mxu0 %v983_v8  ;;  %1488 = vmatmul.mubr.f32.gmra.mxu1 %v985_v2 }
 0x18f   : > { %v988_v17 = vmax.f32 %v576_v12, 0.0  ;;  %v990_v18 = vmax.f32 %v833_v13, 0.0  ;;  %v837_v19 = vadd.f32 %v836_v16, %v2366_v42  ;;  %v580_v21 = vadd.f32 %v579_v15, %v2368_v43 }
 0x190   : > { %v581_v22 = vpop.f32.mrf.mxu0  ;;  %v838_v23 = vpop.f32.mrf.mxu1 }
 0x191   : > { %v582_v24 = vadd.f32 %v581_v22, %v2370_v44  ;;  %v839_v25 = vadd.f32 %v838_v23, %v2372_v45  ;;  %1267 = vmatprep.mubr.f32.mxu0 %v988_v17  ;;  %1492 = vmatprep.mubr.f32.mxu1 %v990_v18  ;;  %v993_v26 = vmax.f32 %v837_v19, 0.0  ;;  %v991_v32 = vmax.f32 %v580_v21, 0.0 }
 0x192   : > { %v585_v27 = vpop.f32.mrf.mxu0  ;;  %v842_v28 = vpop.f32.mrf.mxu1  ;;  %1268 = vmatmul.mubr.f32.gmra.mxu0 %v987_v20  ;;  %1493 = vmatmul.mubr.f32.gmra.mxu1 %v989_v14 }
 0x193   : > { %v992_v29 = vmax.f32 %v582_v24, 0.0  ;;  %v994_v30 = vmax.f32 %v839_v25, 0.0  ;;  %v843_v31 = vadd.f32 %v842_v28, %v2366_v42  ;;  %v586_v33 = vadd.f32 %v585_v27, %v2368_v43 }
 0x194   : > { %v587_v34 = vpop.f32.mrf.mxu0  ;;  %v844_v35 = vpop.f32.mrf.mxu1 }
 0x195   : > { %v588_v36 = vadd.f32 %v587_v34, %v2370_v44  ;;  %v845_v37 = vadd.f32 %v844_v35, %v2372_v45  ;;  %1272 = vmatprep.mubr.f32.mxu0 %v992_v29  ;;  %1497 = vmatprep.mubr.f32.mxu1 %v994_v30  ;;  %v997_v38 = vmax.f32 %v843_v31, 0.0  ;;  %v995_v0 = vmax.f32 %v586_v33, 0.0 }
 0x196   : > { %v591_v39 = vpop.f32.mrf.mxu0  ;;  %v848_v40 = vpop.f32.mrf.mxu1  ;;  %1273 = vmatmul.mubr.f32.gmra.mxu0 %v991_v32  ;;  %1498 = vmatmul.mubr.f32.gmra.mxu1 %v993_v26 }
 0x197   : > { %v996_v41 = vmax.f32 %v588_v36, 0.0  ;;  %v998_v46 = vmax.f32 %v845_v37, 0.0  ;;  %v849_v47 = vadd.f32 %v848_v40, %v2366_v42  ;;  %v592_v48 = vadd.f32 %v591_v39, %v2368_v43 }
 0x198   : > { %v593_v49 = vpop.f32.mrf.mxu0  ;;  %v850_v50 = vpop.f32.mrf.mxu1 }
 0x199   : > { %v594_v51 = vadd.f32 %v593_v49, %v2370_v44  ;;  %v851_v52 = vadd.f32 %v850_v50, %v2372_v45  ;;  %1277 = vmatprep.mubr.f32.mxu0 %v996_v41  ;;  %1502 = vmatprep.mubr.f32.mxu1 %v998_v46  ;;  %v1001_v53 = vmax.f32 %v849_v47, 0.0  ;;  %v999_v59 = vmax.f32 %v592_v48, 0.0 }
 0x19a   : > { %v597_v54 = vpop.f32.mrf.mxu0  ;;  %v854_v55 = vpop.f32.mrf.mxu1  ;;  %1278 = vmatmul.mubr.f32.gmra.mxu0 %v995_v0  ;;  %1503 = vmatmul.mubr.f32.gmra.mxu1 %v997_v38 }
 0x19b   : > { %v1000_v56 = vmax.f32 %v594_v51, 0.0  ;;  %v1002_v57 = vmax.f32 %v851_v52, 0.0  ;;  %v855_v58 = vadd.f32 %v854_v55, %v2366_v42  ;;  %v598_v60 = vadd.f32 %v597_v54, %v2368_v43 }
 0x19c   : > { %v599_v61 = vpop.f32.mrf.mxu0  ;;  %v856_v62 = vpop.f32.mrf.mxu1 }
 0x19d   : > { %v600_v63 = vadd.f32 %v599_v61, %v2370_v44  ;;  %v857_v1 = vadd.f32 %v856_v62, %v2372_v45  ;;  %1282 = vmatprep.mubr.f32.mxu0 %v1000_v56  ;;  %1507 = vmatprep.mubr.f32.mxu1 %v1002_v57  ;;  %v1005_v2 = vmax.f32 %v855_v58, 0.0  ;;  %v1003_v8 = vmax.f32 %v598_v60, 0.0 }
 0x19e   : > { %v603_v3 = vpop.f32.mrf.mxu0  ;;  %v860_v4 = vpop.f32.mrf.mxu1  ;;  %1283 = vmatmul.mubr.f32.gmra.mxu0 %v999_v59  ;;  %1508 = vmatmul.mubr.f32.gmra.mxu1 %v1001_v53 }
 0x19f   : > { %v1004_v5 = vmax.f32 %v600_v63, 0.0  ;;  %v1006_v6 = vmax.f32 %v857_v1, 0.0  ;;  %v861_v7 = vadd.f32 %v860_v4, %v2366_v42  ;;  %v604_v9 = vadd.f32 %v603_v3, %v2368_v43 }
 0x1a0   : > { %v605_v10 = vpop.f32.mrf.mxu0  ;;  %v862_v11 = vpop.f32.mrf.mxu1 }
 0x1a1   : > { %v606_v12 = vadd.f32 %v605_v10, %v2370_v44  ;;  %v863_v13 = vadd.f32 %v862_v11, %v2372_v45  ;;  %1287 = vmatprep.mubr.f32.mxu0 %v1004_v5  ;;  %1512 = vmatprep.mubr.f32.mxu1 %v1006_v6  ;;  %v1009_v14 = vmax.f32 %v861_v7, 0.0  ;;  %v1007_v20 = vmax.f32 %v604_v9, 0.0 }
 0x1a2   : > { %v609_v15 = vpop.f32.mrf.mxu0  ;;  %v866_v16 = vpop.f32.mrf.mxu1  ;;  %1288 = vmatmul.mubr.f32.gmra.mxu0 %v1003_v8  ;;  %1513 = vmatmul.mubr.f32.gmra.mxu1 %v1005_v2 }
 0x1a3   : > { %v1008_v17 = vmax.f32 %v606_v12, 0.0  ;;  %v1010_v18 = vmax.f32 %v863_v13, 0.0  ;;  %v867_v19 = vadd.f32 %v866_v16, %v2366_v42  ;;  %v610_v21 = vadd.f32 %v609_v15, %v2368_v43 }
 0x1a4   : > { %v611_v22 = vpop.f32.mrf.mxu0  ;;  %v868_v23 = vpop.f32.mrf.mxu1 }
 0x1a5   : > { %v612_v24 = vadd.f32 %v611_v22, %v2370_v44  ;;  %v869_v25 = vadd.f32 %v868_v23, %v2372_v45  ;;  %1292 = vmatprep.mubr.f32.mxu0 %v1008_v17  ;;  %1517 = vmatprep.mubr.f32.mxu1 %v1010_v18  ;;  %v1013_v26 = vmax.f32 %v867_v19, 0.0  ;;  %v1011_v32 = vmax.f32 %v610_v21, 0.0 }
 0x1a6   : > { %v615_v27 = vpop.f32.mrf.mxu0  ;;  %v872_v28 = vpop.f32.mrf.mxu1  ;;  %1293 = vmatmul.mubr.f32.gmra.mxu0 %v1007_v20  ;;  %1518 = vmatmul.mubr.f32.gmra.mxu1 %v1009_v14 }
 0x1a7   : > { %v1012_v29 = vmax.f32 %v612_v24, 0.0  ;;  %v1014_v30 = vmax.f32 %v869_v25, 0.0  ;;  %v873_v31 = vadd.f32 %v872_v28, %v2366_v42  ;;  %v616_v33 = vadd.f32 %v615_v27, %v2368_v43 }
 0x1a8   : > { %v617_v34 = vpop.f32.mrf.mxu0  ;;  %v874_v35 = vpop.f32.mrf.mxu1 }
 0x1a9   : > { %v618_v36 = vadd.f32 %v617_v34, %v2370_v44  ;;  %v875_v37 = vadd.f32 %v874_v35, %v2372_v45  ;;  %1297 = vmatprep.mubr.f32.mxu0 %v1012_v29  ;;  %1522 = vmatprep.mubr.f32.mxu1 %v1014_v30  ;;  %v1017_v38 = vmax.f32 %v873_v31, 0.0  ;;  %v1015_v0 = vmax.f32 %v616_v33, 0.0 }
 0x1aa   : > { %v621_v39 = vpop.f32.mrf.mxu0  ;;  %v878_v40 = vpop.f32.mrf.mxu1  ;;  %1298 = vmatmul.mubr.f32.gmra.mxu0 %v1011_v32  ;;  %1523 = vmatmul.mubr.f32.gmra.mxu1 %v1013_v26 }
 0x1ab   : > { %v1016_v41 = vmax.f32 %v618_v36, 0.0  ;;  %v1018_v46 = vmax.f32 %v875_v37, 0.0  ;;  %v879_v47 = vadd.f32 %v878_v40, %v2366_v42  ;;  %v622_v48 = vadd.f32 %v621_v39, %v2368_v43 }
 0x1ac   : > { %v623_v49 = vpop.f32.mrf.mxu0  ;;  %v880_v50 = vpop.f32.mrf.mxu1 }
 0x1ad   : > { %v624_v51 = vadd.f32 %v623_v49, %v2370_v44  ;;  %v881_v52 = vadd.f32 %v880_v50, %v2372_v45  ;;  %1302 = vmatprep.mubr.f32.mxu0 %v1016_v41  ;;  %1527 = vmatprep.mubr.f32.mxu1 %v1018_v46  ;;  %v1021_v53 = vmax.f32 %v879_v47, 0.0  ;;  %v1019_v59 = vmax.f32 %v622_v48, 0.0 }
 0x1ae   : > { %v627_v54 = vpop.f32.mrf.mxu0  ;;  %v884_v55 = vpop.f32.mrf.mxu1  ;;  %1303 = vmatmul.mubr.f32.gmra.mxu0 %v1015_v0  ;;  %1528 = vmatmul.mubr.f32.gmra.mxu1 %v1017_v38 }
 0x1af   : > { %v1020_v56 = vmax.f32 %v624_v51, 0.0  ;;  %v1022_v57 = vmax.f32 %v881_v52, 0.0  ;;  %v885_v58 = vadd.f32 %v884_v55, %v2366_v42  ;;  %v628_v60 = vadd.f32 %v627_v54, %v2368_v43 }
 0x1b0   : > { %v629_v61 = vpop.f32.mrf.mxu0  ;;  %v886_v62 = vpop.f32.mrf.mxu1 }
 0x1b1   : > { %v630_v63 = vadd.f32 %v629_v61, %v2370_v44  ;;  %v887_v1 = vadd.f32 %v886_v62, %v2372_v45  ;;  %1307 = vmatprep.mubr.f32.mxu0 %v1020_v56  ;;  %1532 = vmatprep.mubr.f32.mxu1 %v1022_v57  ;;  %v1025_v2 = vmax.f32 %v885_v58, 0.0  ;;  %v1023_v8 = vmax.f32 %v628_v60, 0.0 }
 0x1b2   : > { %v633_v3 = vpop.f32.mrf.mxu0  ;;  %v890_v4 = vpop.f32.mrf.mxu1  ;;  %1308 = vmatmul.mubr.f32.gmra.mxu0 %v1019_v59  ;;  %1533 = vmatmul.mubr.f32.gmra.mxu1 %v1021_v53 }
 0x1b3   : > { %v1024_v5 = vmax.f32 %v630_v63, 0.0  ;;  %v1026_v6 = vmax.f32 %v887_v1, 0.0  ;;  %v891_v7 = vadd.f32 %v890_v4, %v2366_v42  ;;  %v634_v9 = vadd.f32 %v633_v3, %v2368_v43 }
 0x1b4   : > { %v635_v10 = vpop.f32.mrf.mxu0  ;;  %v892_v11 = vpop.f32.mrf.mxu1 }
 0x1b5   : > { %v636_v12 = vadd.f32 %v635_v10, %v2370_v44  ;;  %v893_v13 = vadd.f32 %v892_v11, %v2372_v45  ;;  %1312 = vmatprep.mubr.f32.mxu0 %v1024_v5  ;;  %1537 = vmatprep.mubr.f32.mxu1 %v1026_v6  ;;  %v1029_v14 = vmax.f32 %v891_v7, 0.0  ;;  %v1027_v20 = vmax.f32 %v634_v9, 0.0 }
 0x1b6   : > { %v639_v15 = vpop.f32.mrf.mxu0  ;;  %v896_v16 = vpop.f32.mrf.mxu1  ;;  %1313 = vmatmul.mubr.f32.gmra.mxu0 %v1023_v8  ;;  %1538 = vmatmul.mubr.f32.gmra.mxu1 %v1025_v2 }
 0x1b7   : > { %v1028_v17 = vmax.f32 %v636_v12, 0.0  ;;  %v1030_v18 = vmax.f32 %v893_v13, 0.0  ;;  %v897_v19 = vadd.f32 %v896_v16, %v2366_v42  ;;  %v640_v21 = vadd.f32 %v639_v15, %v2368_v43 }
 0x1b8   : > { %v641_v22 = vpop.f32.mrf.mxu0  ;;  %v898_v23 = vpop.f32.mrf.mxu1 }
 0x1b9   : > { %v642_v24 = vadd.f32 %v641_v22, %v2370_v44  ;;  %v899_v25 = vadd.f32 %v898_v23, %v2372_v45  ;;  %1317 = vmatprep.mubr.f32.mxu0 %v1028_v17  ;;  %1542 = vmatprep.mubr.f32.mxu1 %v1030_v18  ;;  %v1033_v26 = vmax.f32 %v897_v19, 0.0  ;;  %v1031_v32 = vmax.f32 %v640_v21, 0.0 }
 0x1ba   : > { %v645_v27 = vpop.f32.mrf.mxu0  ;;  %v902_v28 = vpop.f32.mrf.mxu1  ;;  %1318 = vmatmul.mubr.f32.gmra.mxu0 %v1027_v20  ;;  %1543 = vmatmul.mubr.f32.gmra.mxu1 %v1029_v14 }
 0x1bb   : > { %v1032_v29 = vmax.f32 %v642_v24, 0.0  ;;  %v1034_v30 = vmax.f32 %v899_v25, 0.0  ;;  %v903_v31 = vadd.f32 %v902_v28, %v2366_v42  ;;  %v646_v33 = vadd.f32 %v645_v27, %v2368_v43 }
 0x1bc   : > { %v647_v34 = vpop.f32.mrf.mxu0  ;;  %v904_v35 = vpop.f32.mrf.mxu1 }
 0x1bd   : > { %v648_v36 = vadd.f32 %v647_v34, %v2370_v44  ;;  %v905_v37 = vadd.f32 %v904_v35, %v2372_v45  ;;  %1322 = vmatprep.mubr.f32.mxu0 %v1032_v29  ;;  %1547 = vmatprep.mubr.f32.mxu1 %v1034_v30  ;;  %v1037_v38 = vmax.f32 %v903_v31, 0.0  ;;  %v1035_v0 = vmax.f32 %v646_v33, 0.0 }
 0x1be   : > { %v651_v39 = vpop.f32.mrf.mxu0  ;;  %v908_v40 = vpop.f32.mrf.mxu1  ;;  %1323 = vmatmul.mubr.f32.gmra.mxu0 %v1031_v32  ;;  %1548 = vmatmul.mubr.f32.gmra.mxu1 %v1033_v26 }
 0x1bf   : > { %v1036_v41 = vmax.f32 %v648_v36, 0.0  ;;  %v1038_v46 = vmax.f32 %v905_v37, 0.0  ;;  %v909_v47 = vadd.f32 %v908_v40, %v2366_v42  ;;  %v652_v48 = vadd.f32 %v651_v39, %v2368_v43 }
 0x1c0   : > { %v653_v49 = vpop.f32.mrf.mxu0  ;;  %v910_v50 = vpop.f32.mrf.mxu1 }
 0x1c1   : > { %v654_v51 = vadd.f32 %v653_v49, %v2370_v44  ;;  %v911_v52 = vadd.f32 %v910_v50, %v2372_v45  ;;  %1327 = vmatprep.mubr.f32.mxu0 %v1036_v41  ;;  %1552 = vmatprep.mubr.f32.mxu1 %v1038_v46  ;;  %v1041_v53 = vmax.f32 %v909_v47, 0.0  ;;  %v1039_v59 = vmax.f32 %v652_v48, 0.0 }
 0x1c2   : > { %v657_v54 = vpop.f32.mrf.mxu0  ;;  %v914_v55 = vpop.f32.mrf.mxu1  ;;  %1328 = vmatmul.mubr.f32.gmra.mxu0 %v1035_v0  ;;  %1553 = vmatmul.mubr.f32.gmra.mxu1 %v1037_v38 }
 0x1c3   : > { %v1040_v56 = vmax.f32 %v654_v51, 0.0  ;;  %v1042_v57 = vmax.f32 %v911_v52, 0.0  ;;  %v915_v58 = vadd.f32 %v914_v55, %v2366_v42  ;;  %v658_v60 = vadd.f32 %v657_v54, %v2368_v43  ;;  %v2505_v42 = vld [vmem:[%s2629_s4] ss:$0 sm:$0xff] }
 0x1c4   : > { %v659_v61 = vpop.f32.mrf.mxu0  ;;  %v916_v62 = vpop.f32.mrf.mxu1 }
 0x1c5   : > { %v660_v63 = vadd.f32 %v659_v61, %v2370_v44  ;;  %v917_v1 = vadd.f32 %v916_v62, %v2372_v45  ;;  %1332 = vmatprep.mubr.f32.mxu0 %v1040_v56  ;;  %1557 = vmatprep.mubr.f32.mxu1 %v1042_v57  ;;  %v1045_v2 = vmax.f32 %v915_v58, 0.0  ;;  %v1043_v5 = vmax.f32 %v658_v60, 0.0 }
 0x1c6   : > { %1333 = vmatmul.mubr.f32.gmra.mxu0 %v1039_v59  ;;  %1558 = vmatmul.mubr.f32.gmra.mxu1 %v1041_v53 }
 0x1c7   : > { %v1044_v3 = vmax.f32 %v660_v63, 0.0  ;;  %v1046_v4 = vmax.f32 %v917_v1, 0.0 }
 0x1c9   : > { %1337 = vmatprep.mubr.f32.mxu0 %v1044_v3  ;;  %1562 = vmatprep.mubr.f32.mxu1 %v1046_v4 }
 0x1ca   : > { %1338 = vmatmul.mubr.f32.gmra.mxu0 %v1043_v5  ;;  %1563 = vmatmul.mubr.f32.gmra.mxu1 %v1045_v2 }
 0x20e   : > { %v1184_v43 = vpop.f32.mrf.mxu0  ;;  %v1409_v44 = vpop.f32.mrf.mxu1 }
 0x20f   : > { %v1185_v45 = vadd.f32 %v2505_v42, %v1184_v43 }
 0x210   : > { %v1186_v6 = vpop.f32.mrf.mxu0  ;;  %v1411_v7 = vpop.f32.mrf.mxu1 }
 0x211   : > { %v1410_v8 = vadd.f32 %v1409_v44, %v1185_v45 }
 0x212   : > { %v1189_v9 = vpop.f32.mrf.mxu0  ;;  %v1414_v10 = vpop.f32.mrf.mxu1 }
 0x213   : > { %1568 = vst [vmem:[%s2510_s27] sm:$0xff] %v1410_v8  ;;  %v1190_v11 = vadd.f32 %v2505_v42, %v1189_v9 }
 0x214   : > { %v1191_v12 = vpop.f32.mrf.mxu0  ;;  %v1416_v13 = vpop.f32.mrf.mxu1 }
 0x215   : > { %v1415_v14 = vadd.f32 %v1414_v10, %v1190_v11 }
 0x216   : > { %v1194_v15 = vpop.f32.mrf.mxu0  ;;  %v1419_v16 = vpop.f32.mrf.mxu1 }
 0x217   : > { %1569 = vst [vmem:[%s2510_s27 + $0x8] sm:$0xff] %v1415_v14  ;;  %v1195_v17 = vadd.f32 %v2505_v42, %v1194_v15 }
 0x218   : > { %v1196_v18 = vpop.f32.mrf.mxu0  ;;  %v1421_v19 = vpop.f32.mrf.mxu1 }
 0x219   : > { %v1420_v20 = vadd.f32 %v1419_v16, %v1195_v17 }
 0x21a   : > { %v1199_v21 = vpop.f32.mrf.mxu0  ;;  %v1424_v22 = vpop.f32.mrf.mxu1 }
 0x21b   : > { %1570 = vst [vmem:[%s2510_s27 + $0x10] sm:$0xff] %v1420_v20  ;;  %v1200_v23 = vadd.f32 %v2505_v42, %v1199_v21 }
 0x21c   : > { %v1201_v24 = vpop.f32.mrf.mxu0  ;;  %v1426_v25 = vpop.f32.mrf.mxu1 }
 0x21d   : > { %v1425_v26 = vadd.f32 %v1424_v22, %v1200_v23 }
 0x21e   : > { %v1204_v27 = vpop.f32.mrf.mxu0  ;;  %v1429_v28 = vpop.f32.mrf.mxu1 }
 0x21f   : > { %1571 = vst [vmem:[%s2510_s27 + $0x18] sm:$0xff] %v1425_v26  ;;  %v1205_v29 = vadd.f32 %v2505_v42, %v1204_v27 }
 0x220   : > { %v1206_v30 = vpop.f32.mrf.mxu0  ;;  %v1431_v31 = vpop.f32.mrf.mxu1 }
 0x221   : > { %v1430_v32 = vadd.f32 %v1429_v28, %v1205_v29 }
 0x222   : > { %v1209_v33 = vpop.f32.mrf.mxu0  ;;  %v1434_v34 = vpop.f32.mrf.mxu1 }
 0x223   : > { %1572 = vst [vmem:[%s2510_s27 + $0x20] sm:$0xff] %v1430_v32  ;;  %v1210_v35 = vadd.f32 %v2505_v42, %v1209_v33 }
 0x224   : > { %v1211_v36 = vpop.f32.mrf.mxu0  ;;  %v1436_v37 = vpop.f32.mrf.mxu1 }
 0x225   : > { %v1435_v38 = vadd.f32 %v1434_v34, %v1210_v35 }
 0x226   : > { %v1214_v39 = vpop.f32.mrf.mxu0  ;;  %v1439_v40 = vpop.f32.mrf.mxu1 }
 0x227   : > { %1573 = vst [vmem:[%s2510_s27 + $0x28] sm:$0xff] %v1435_v38  ;;  %v1215_v41 = vadd.f32 %v2505_v42, %v1214_v39 }
 0x228   : > { %v1216_v46 = vpop.f32.mrf.mxu0  ;;  %v1441_v47 = vpop.f32.mrf.mxu1 }
 0x229   : > { %v1440_v0 = vadd.f32 %v1439_v40, %v1215_v41 }
 0x22a   : > { %v1219_v48 = vpop.f32.mrf.mxu0  ;;  %v1444_v49 = vpop.f32.mrf.mxu1 }
 0x22b   : > { %1574 = vst [vmem:[%s2510_s27 + $0x30] sm:$0xff] %v1440_v0  ;;  %v1220_v50 = vadd.f32 %v2505_v42, %v1219_v48 }
 0x22c   : > { %v1221_v51 = vpop.f32.mrf.mxu0  ;;  %v1446_v52 = vpop.f32.mrf.mxu1 }
 0x22d   : > { %v1445_v53 = vadd.f32 %v1444_v49, %v1220_v50 }
 0x22e   : > { %v1224_v54 = vpop.f32.mrf.mxu0  ;;  %v1449_v55 = vpop.f32.mrf.mxu1 }
 0x22f   : > { %1575 = vst [vmem:[%s2510_s27 + $0x38] sm:$0xff] %v1445_v53  ;;  %v1225_v56 = vadd.f32 %v2505_v42, %v1224_v54 }
 0x230   : > { %v1226_v57 = vpop.f32.mrf.mxu0  ;;  %v1451_v58 = vpop.f32.mrf.mxu1 }
 0x231   : > { %v1450_v59 = vadd.f32 %v1449_v55, %v1225_v56 }
 0x232   : > { %v1229_v60 = vpop.f32.mrf.mxu0  ;;  %v1454_v61 = vpop.f32.mrf.mxu1 }
 0x233   : > { %1576 = vst [vmem:[%s2510_s27 + $0x40] sm:$0xff] %v1450_v59  ;;  %v1230_v62 = vadd.f32 %v2505_v42, %v1229_v60 }
 0x234   : > { %v1231_v63 = vpop.f32.mrf.mxu0  ;;  %v1456_v1 = vpop.f32.mrf.mxu1 }
 0x235   : > { %v1455_v2 = vadd.f32 %v1454_v61, %v1230_v62 }
 0x236   : > { %v1234_v3 = vpop.f32.mrf.mxu0  ;;  %v1459_v4 = vpop.f32.mrf.mxu1 }
 0x237   : > { %1577 = vst [vmem:[%s2510_s27 + $0x48] sm:$0xff] %v1455_v2  ;;  %v1235_v5 = vadd.f32 %v2505_v42, %v1234_v3 }
 0x238   : > { %v1236_v43 = vpop.f32.mrf.mxu0  ;;  %v1461_v44 = vpop.f32.mrf.mxu1 }
 0x239   : > { %v1460_v45 = vadd.f32 %v1459_v4, %v1235_v5 }
 0x23a   : > { %v1239_v6 = vpop.f32.mrf.mxu0  ;;  %v1464_v7 = vpop.f32.mrf.mxu1 }
 0x23b   : > { %1578 = vst [vmem:[%s2510_s27 + $0x50] sm:$0xff] %v1460_v45  ;;  %v1240_v8 = vadd.f32 %v2505_v42, %v1239_v6 }
 0x23c   : > { %v1241_v9 = vpop.f32.mrf.mxu0  ;;  %v1466_v10 = vpop.f32.mrf.mxu1 }
 0x23d   : > { %v1465_v11 = vadd.f32 %v1464_v7, %v1240_v8 }
 0x23e   : > { %v1244_v12 = vpop.f32.mrf.mxu0  ;;  %v1469_v13 = vpop.f32.mrf.mxu1 }
 0x23f   : > { %1579 = vst [vmem:[%s2510_s27 + $0x58] sm:$0xff] %v1465_v11  ;;  %v1245_v14 = vadd.f32 %v2505_v42, %v1244_v12 }
 0x240   : > { %v1246_v15 = vpop.f32.mrf.mxu0  ;;  %v1471_v16 = vpop.f32.mrf.mxu1 }
 0x241   : > { %v1470_v17 = vadd.f32 %v1469_v13, %v1245_v14 }
 0x242   : > { %v1249_v18 = vpop.f32.mrf.mxu0  ;;  %v1474_v19 = vpop.f32.mrf.mxu1 }
 0x243   : > { %1580 = vst [vmem:[%s2510_s27 + $0x60] sm:$0xff] %v1470_v17  ;;  %v1250_v20 = vadd.f32 %v2505_v42, %v1249_v18 }
 0x244   : > { %v1251_v21 = vpop.f32.mrf.mxu0  ;;  %v1476_v22 = vpop.f32.mrf.mxu1 }
 0x245   : > { %v1475_v23 = vadd.f32 %v1474_v19, %v1250_v20 }
 0x246   : > { %v1254_v24 = vpop.f32.mrf.mxu0  ;;  %v1479_v25 = vpop.f32.mrf.mxu1 }
 0x247   : > { %1581 = vst [vmem:[%s2510_s27 + $0x68] sm:$0xff] %v1475_v23  ;;  %v1255_v26 = vadd.f32 %v2505_v42, %v1254_v24 }
 0x248   : > { %v1256_v27 = vpop.f32.mrf.mxu0  ;;  %v1481_v28 = vpop.f32.mrf.mxu1 }
 0x249   : > { %v1480_v29 = vadd.f32 %v1479_v25, %v1255_v26 }
 0x24a   : > { %v1259_v30 = vpop.f32.mrf.mxu0  ;;  %v1484_v31 = vpop.f32.mrf.mxu1 }
 0x24b   : > { %1582 = vst [vmem:[%s2510_s27 + $0x70] sm:$0xff] %v1480_v29  ;;  %v1260_v32 = vadd.f32 %v2505_v42, %v1259_v30 }
 0x24c   : > { %v1261_v33 = vpop.f32.mrf.mxu0  ;;  %v1486_v34 = vpop.f32.mrf.mxu1 }
 0x24d   : > { %v1485_v35 = vadd.f32 %v1484_v31, %v1260_v32 }
 0x24e   : > { %v1264_v36 = vpop.f32.mrf.mxu0  ;;  %v1489_v37 = vpop.f32.mrf.mxu1 }
 0x24f   : > { %1583 = vst [vmem:[%s2510_s27 + $0x78] sm:$0xff] %v1485_v35  ;;  %v1265_v38 = vadd.f32 %v2505_v42, %v1264_v36 }
 0x250   : > { %v1266_v39 = vpop.f32.mrf.mxu0  ;;  %v1491_v40 = vpop.f32.mrf.mxu1 }
 0x251   : > { %v1490_v41 = vadd.f32 %v1489_v37, %v1265_v38 }
 0x252   : > { %v1269_v46 = vpop.f32.mrf.mxu0  ;;  %v1494_v47 = vpop.f32.mrf.mxu1 }
 0x253   : > { %1584 = vst [vmem:[%s2510_s27 + $0x80] sm:$0xff] %v1490_v41  ;;  %v1270_v0 = vadd.f32 %v2505_v42, %v1269_v46 }
 0x254   : > { %v1271_v48 = vpop.f32.mrf.mxu0  ;;  %v1496_v49 = vpop.f32.mrf.mxu1 }
 0x255   : > { %v1495_v50 = vadd.f32 %v1494_v47, %v1270_v0 }
 0x256   : > { %v1274_v51 = vpop.f32.mrf.mxu0  ;;  %v1499_v52 = vpop.f32.mrf.mxu1 }
 0x257   : > { %1585 = vst [vmem:[%s2510_s27 + $0x88] sm:$0xff] %v1495_v50  ;;  %v1275_v53 = vadd.f32 %v2505_v42, %v1274_v51 }
 0x258   : > { %v1276_v54 = vpop.f32.mrf.mxu0  ;;  %v1501_v55 = vpop.f32.mrf.mxu1 }
 0x259   : > { %v1500_v56 = vadd.f32 %v1499_v52, %v1275_v53 }
 0x25a   : > { %v1279_v57 = vpop.f32.mrf.mxu0  ;;  %v1504_v58 = vpop.f32.mrf.mxu1 }
 0x25b   : > { %1586 = vst [vmem:[%s2510_s27 + $0x90] sm:$0xff] %v1500_v56  ;;  %v1280_v59 = vadd.f32 %v2505_v42, %v1279_v57 }
 0x25c   : > { %v1281_v60 = vpop.f32.mrf.mxu0  ;;  %v1506_v61 = vpop.f32.mrf.mxu1 }
 0x25d   : > { %v1505_v62 = vadd.f32 %v1504_v58, %v1280_v59 }
 0x25e   : > { %v1284_v63 = vpop.f32.mrf.mxu0  ;;  %v1509_v1 = vpop.f32.mrf.mxu1 }
 0x25f   : > { %1587 = vst [vmem:[%s2510_s27 + $0x98] sm:$0xff] %v1505_v62  ;;  %v1285_v2 = vadd.f32 %v2505_v42, %v1284_v63 }
 0x260   : > { %v1286_v3 = vpop.f32.mrf.mxu0  ;;  %v1511_v4 = vpop.f32.mrf.mxu1 }
 0x261   : > { %v1510_v5 = vadd.f32 %v1509_v1, %v1285_v2 }
 0x262   : > { %v1289_v43 = vpop.f32.mrf.mxu0  ;;  %v1514_v44 = vpop.f32.mrf.mxu1 }
 0x263   : > { %1588 = vst [vmem:[%s2510_s27 + $0xa0] sm:$0xff] %v1510_v5  ;;  %v1290_v45 = vadd.f32 %v2505_v42, %v1289_v43 }
 0x264   : > { %v1291_v6 = vpop.f32.mrf.mxu0  ;;  %v1516_v7 = vpop.f32.mrf.mxu1 }
 0x265   : > { %v1515_v8 = vadd.f32 %v1514_v44, %v1290_v45 }
 0x266   : > { %v1294_v9 = vpop.f32.mrf.mxu0  ;;  %v1519_v10 = vpop.f32.mrf.mxu1 }
 0x267   : > { %1589 = vst [vmem:[%s2510_s27 + $0xa8] sm:$0xff] %v1515_v8  ;;  %v1295_v11 = vadd.f32 %v2505_v42, %v1294_v9 }
 0x268   : > { %v1296_v12 = vpop.f32.mrf.mxu0  ;;  %v1521_v13 = vpop.f32.mrf.mxu1 }
 0x269   : > { %v1520_v14 = vadd.f32 %v1519_v10, %v1295_v11 }
 0x26a   : > { %v1299_v15 = vpop.f32.mrf.mxu0  ;;  %v1524_v16 = vpop.f32.mrf.mxu1 }
 0x26b   : > { %1590 = vst [vmem:[%s2510_s27 + $0xb0] sm:$0xff] %v1520_v14  ;;  %v1300_v17 = vadd.f32 %v2505_v42, %v1299_v15 }
 0x26c   : > { %v1301_v18 = vpop.f32.mrf.mxu0  ;;  %v1526_v19 = vpop.f32.mrf.mxu1 }
 0x26d   : > { %v1525_v20 = vadd.f32 %v1524_v16, %v1300_v17 }
 0x26e   : > { %v1304_v21 = vpop.f32.mrf.mxu0  ;;  %v1529_v22 = vpop.f32.mrf.mxu1 }
 0x26f   : > { %1591 = vst [vmem:[%s2510_s27 + $0xb8] sm:$0xff] %v1525_v20  ;;  %v1305_v23 = vadd.f32 %v2505_v42, %v1304_v21 }
 0x270   : > { %v1306_v24 = vpop.f32.mrf.mxu0  ;;  %v1531_v25 = vpop.f32.mrf.mxu1 }
 0x271   : > { %v1530_v26 = vadd.f32 %v1529_v22, %v1305_v23 }
 0x272   : > { %v1309_v27 = vpop.f32.mrf.mxu0  ;;  %v1534_v28 = vpop.f32.mrf.mxu1 }
 0x273   : > { %1592 = vst [vmem:[%s2510_s27 + $0xc0] sm:$0xff] %v1530_v26  ;;  %v1310_v29 = vadd.f32 %v2505_v42, %v1309_v27 }
 0x274   : > { %v1311_v30 = vpop.f32.mrf.mxu0  ;;  %v1536_v31 = vpop.f32.mrf.mxu1 }
 0x275   : > { %v1535_v32 = vadd.f32 %v1534_v28, %v1310_v29 }
 0x276   : > { %v1314_v33 = vpop.f32.mrf.mxu0  ;;  %v1539_v34 = vpop.f32.mrf.mxu1 }
 0x277   : > { %1593 = vst [vmem:[%s2510_s27 + $0xc8] sm:$0xff] %v1535_v32  ;;  %v1315_v35 = vadd.f32 %v2505_v42, %v1314_v33 }
 0x278   : > { %v1316_v36 = vpop.f32.mrf.mxu0  ;;  %v1541_v37 = vpop.f32.mrf.mxu1 }
 0x279   : > { %v1540_v38 = vadd.f32 %v1539_v34, %v1315_v35 }
 0x27a   : > { %v1319_v39 = vpop.f32.mrf.mxu0  ;;  %v1544_v40 = vpop.f32.mrf.mxu1 }
 0x27b   : > { %1594 = vst [vmem:[%s2510_s27 + $0xd0] sm:$0xff] %v1540_v38  ;;  %v1320_v41 = vadd.f32 %v2505_v42, %v1319_v39 }
 0x27c   : > { %v1321_v46 = vpop.f32.mrf.mxu0  ;;  %v1546_v47 = vpop.f32.mrf.mxu1 }
 0x27d   : > { %v1545_v0 = vadd.f32 %v1544_v40, %v1320_v41 }
 0x27e   : > { %v1324_v48 = vpop.f32.mrf.mxu0  ;;  %v1549_v49 = vpop.f32.mrf.mxu1 }
 0x27f   : > { %1595 = vst [vmem:[%s2510_s27 + $0xd8] sm:$0xff] %v1545_v0  ;;  %v1325_v50 = vadd.f32 %v2505_v42, %v1324_v48 }
 0x280   : > { %v1326_v51 = vpop.f32.mrf.mxu0  ;;  %v1551_v52 = vpop.f32.mrf.mxu1 }
 0x281   : > { %v1550_v53 = vadd.f32 %v1549_v49, %v1325_v50 }
 0x282   : > { %v1329_v54 = vpop.f32.mrf.mxu0  ;;  %v1554_v55 = vpop.f32.mrf.mxu1 }
 0x283   : > { %1596 = vst [vmem:[%s2510_s27 + $0xe0] sm:$0xff] %v1550_v53  ;;  %v1330_v56 = vadd.f32 %v2505_v42, %v1329_v54 }
 0x284   : > { %v1331_v57 = vpop.f32.mrf.mxu0  ;;  %v1556_v58 = vpop.f32.mrf.mxu1 }
 0x285   : > { %v1555_v59 = vadd.f32 %v1554_v55, %v1330_v56 }
 0x286   : > { %v1334_v60 = vpop.f32.mrf.mxu0  ;;  %v1559_v61 = vpop.f32.mrf.mxu1 }
 0x287   : > { %1597 = vst [vmem:[%s2510_s27 + $0xe8] sm:$0xff] %v1555_v59  ;;  %v1335_v62 = vadd.f32 %v2505_v42, %v1334_v60 }
 0x288   : > { %v1336_v63 = vpop.f32.mrf.mxu0  ;;  %v1561_v1 = vpop.f32.mrf.mxu1 }
 0x289   : > { %v1560_v2 = vadd.f32 %v1559_v61, %v1335_v62 }
 0x28a   : > { %v1339_v3 = vpop.f32.mrf.mxu0  ;;  %v1564_v4 = vpop.f32.mrf.mxu1 }
 0x28b   : > { %1598 = vst [vmem:[%s2510_s27 + $0xf0] sm:$0xff] %v1560_v2  ;;  %v1340_v5 = vadd.f32 %v2505_v42, %v1339_v3 }
 0x28c   : > { %v1341_v43 = vpop.f32.mrf.mxu0  ;;  %v1566_v44 = vpop.f32.mrf.mxu1 }
 0x28d   : > { %v1565_v45 = vadd.f32 %v1564_v4, %v1340_v5 }
 0x28f   : > { %1599 = vst [vmem:[%s2510_s27 + $0xf8] sm:$0xff] %v1565_v45 }
 0x290   : > { %1942 = shalt.err (!%p1939_p9)
}
 0x291   : > { %s1943_s23 = scalar_lea.hbm %s2579_s14, 4096  ;;  %s1947_s24 = scalar_lea.hbm %s2630_s5, 8192 }
 0x292   : > { %p1944_p1 = scmp.ne.s32.totalorder %s2579_s14, %s1943_s23  ;;  %p1948_p11 = scmp.lt.s32.totalorder %s2579_s14, %s2630_s5 }
 0x293   : > { %p1949_p13 = scmp.lt.s32.totalorder %s1947_s24, %s1943_s23 }
 0x294   : > { %p1945_p8 = pnand %p1944_p1, %p2650_p6 }
 0x295   : > { %p1950_p2 = por %p1949_p13, %p1948_p11 }
 0x296   : > { %p1946_p10 = pneg %p1945_p8 }
 0x298   : > { %p1951_p4 = pnand %p1950_p2, %p1946_p10 }
 0x29a   : > { %1954 = shalt.err (!%p1951_p4)
}
 0x29b   : > { %s2013_s15 = smov 128   ;;  %s2014_s30 = smov 8  }
 0x29c   : > { %1753 = dma.vmem_to_hbm [thread:$0]  (%p2650_p6), %s2581_s17, 4096, %s2579_s14, %s1601_s22, %s2013_s15, %s2013_s15, %s2014_s30  }
 0x29d PF: > { %s1629_s13 = sand.u32 1, %s1989_s18   ;;  %p2651_p12 = scmp.ne.s32.totalorder %s2637_s25, 0 }
 0x29e   : > { %p2652_p0 = scmp.ge.s32.totalorder %s2001_s21, 2  ;;  %s1630_s11 = scalar_lea.sflag [#allocation4], %s1629_s13 }
 0x2a0   : > { %p1770_p5 = pnand %p2652_p0, %p2651_p12 }
 0x2a2   : > { %p1771_p3 = pneg %p1770_p5 }
 0x2a4   : > { %1984 = dma.done.wait (%p1771_p3), %s1630_s11, 4096  }
 0x2a5   : > { %1986 = vsyncadd (%p1771_p3), %s1630_s11, 4294963200  ;;  %p20_p7 = scmp.ge.s32.totalorder %s2128_s6, 4   ;;  %s2653_s18 = smov %s1993_s19 }
 0x2a6   : > { %s2654_s19 = smov %s1997_s20  ;;  %s2655_s20 = smov %s2138_s10 }
 0x2a7   : > { %s2656_s21 = smov %s2128_s6  ;;  %22 = sbr.rel (!%p20_p7) target bundleno = 7 (0x7), region = 97 }
 0x2ac   :  { %1635 = vsyncpa [#allocation3], 1 }
 0x2ad   :  { %1637 = vsyncpa [#allocation3 + $0x1], 1 }
 0x2ae   :  { %1638 = vsyncpa [#allocation6], 1 }
 0x2af   :  { %1639 = vsyncpa [#allocation9], 1 }
 0x2b0   :  { %1640 = vsyncpa [#allocation4], 1 }
 0x2b1   :  { %1642 = vsyncpa [#allocation4 + $0x1], 1 }

</bundles_post_ra>
